<compile_context>
chip_gen: v5e
topology: v5e:2x2
jax: 0.10.0
libtpu: 0.0.40
codegen_flags: <defaults>
</compile_context>

<pallas_src>
import numpy as np
import jax
import jax.numpy as jnp
from jax import lax
from jax.experimental import pallas as pl
from jax.experimental.pallas import tpu as pltpu

# ----- problem sizes (small, consistent with the module) -----
B = 2             # batch
T = 8             # sequence length (<= block_size=2048 in the module)
C = 32            # n_embd
N_HEAD = 4
HEAD = C // N_HEAD   # head_size = 8
HID = 4 * C          # FFN hidden = 128
EPS = 1e-5           # nn.LayerNorm default eps


def block_kernel(x_ref, wb_ref, pb_ref, o_ref):
    """Single grid step: the whole (B*T, C) problem lives in VMEM."""
    x = x_ref[...]          # (B*T, C)
    wb = wb_ref[...]        # (C, 3C + C + HID + HID) = (32, 384) packed weights
    pb = pb_ref[...]        # (4, 128) packed biases / LN params

    # ---- unpack parameter blobs (static slices) ----
    wqkv = wb[:, 0:3 * C]                       # (C, 3C)
    wp   = wb[:, 3 * C:4 * C]                   # (C, C)
    w1   = wb[:, 4 * C:4 * C + HID]             # (C, HID)
    w2t  = wb[:, 4 * C + HID:4 * C + 2 * HID]   # (C, HID) == w2.T

    g1   = pb[0:1, 0:C]
    be1  = pb[0:1, C:2 * C]
    g2   = pb[0:1, 2 * C:3 * C]
    be2  = pb[0:1, 3 * C:4 * C]
    bqkv = pb[1:2, 0:3 * C]
    bp   = pb[1:2, 3 * C:4 * C]
    b1   = pb[2:3, :]
    b2   = pb[3:4, 0:C]

    # ---- LayerNorm 1 ----
    mu = jnp.mean(x, axis=-1, keepdims=True)
    var = jnp.mean((x - mu) ** 2, axis=-1, keepdims=True)
    h = (x - mu) * lax.rsqrt(var + EPS) * g1 + be1          # (B*T, C)

    # ---- fused QKV projection ----
    qkv = jnp.dot(h, wqkv, preferred_element_type=jnp.float32) + bqkv   # (B*T, 3C)
    q = qkv[:, 0:C]
    k = qkv[:, C:2 * C]
    v = qkv[:, 2 * C:3 * C]

    # ---- head-batched attention: (B*T, C) -> (B*n_head, T, head) ----
    def split_heads(t):
        return (t.reshape(B, T, N_HEAD, HEAD)
                 .swapaxes(1, 2)
                 .reshape(B * N_HEAD, T, HEAD))

    q3 = split_heads(q)
    k3 = split_heads(k)
    v3 = split_heads(v)

    scale = HEAD ** (-0.5)
    scores = jnp.einsum("ztd,zsd->zts", q3, k3,
                        preferred_element_type=jnp.float32) * scale      # (B*H, T, T)

    row = lax.broadcasted_iota(jnp.int32, scores.shape, 1)
    col = lax.broadcasted_iota(jnp.int32, scores.shape, 2)
    scores = jnp.where(row >= col, scores, -jnp.inf)

    # explicit softmax; reciprocal goes to the EUP slot (attention dropout = identity)
    m = jnp.max(scores, axis=-1, keepdims=True)
    e = jnp.exp(scores - m)
    s = jnp.sum(e, axis=-1, keepdims=True)
    p = e * pl.reciprocal(s, approx=True)

    attn = jnp.einsum("zts,zsd->ztd", p, v3,
                      preferred_element_type=jnp.float32)                # (B*H, T, HEAD)
    attn = (attn.reshape(B, N_HEAD, T, HEAD)
                .swapaxes(1, 2)
                .reshape(B * T, C))                                      # (B*T, C)

    # ---- output projection + residual ----
    sa = jnp.dot(attn, wp, preferred_element_type=jnp.float32) + bp
    x1 = x + sa

    # ---- LayerNorm 2 ----
    mu2 = jnp.mean(x1, axis=-1, keepdims=True)
    var2 = jnp.mean((x1 - mu2) ** 2, axis=-1, keepdims=True)
    h2 = (x1 - mu2) * lax.rsqrt(var2 + EPS) * g2 + be2

    # ---- FeedForward: Linear -> ReLU -> Linear (Dropout = identity) ----
    ff = jnp.dot(h2, w1, preferred_element_type=jnp.float32) + b1
    ff = jnp.maximum(ff, 0.0)
    ff = lax.dot_general(ff, w2t,
                         dimension_numbers=(((1,), (1,)), ((), ())),
                         preferred_element_type=jnp.float32) + b2

    o_ref[...] = (x1 + ff).astype(o_ref.dtype)


def pack_params(p):
    """Pack 17 parameter arrays into two lane-dense blobs (done once, outside the kernel)."""
    wqkv = jnp.concatenate([p["wq"], p["wk"], p["wv"]], axis=1)            # (C, 3C)
    wblob = jnp.concatenate([wqkv, p["wp"], p["w1"], p["w2"].T], axis=1)   # (C, 384)

    row0 = jnp.concatenate([p["g1"], p["be1"], p["g2"], p["be2"]], axis=1)       # (1, 4C)
    row1 = jnp.concatenate([p["bq"], p["bk"], p["bv"], p["bp"]], axis=1)         # (1, 4C)
    row2 = p["b1"]                                                               # (1, HID=4C)
    row3 = jnp.concatenate([p["b2"], jnp.zeros((1, 3 * C), jnp.float32)], axis=1)  # (1, 4C)
    pblob = jnp.concatenate([row0, row1, row2, row3], axis=0)                    # (4, 128)
    return wblob, pblob


def transformer_block(x, wblob, pblob):
    """x: (B, T, C) float32. wblob/pblob: packed parameters (see pack_params)."""
    Bn, Tn, Cn = x.shape
    xf = x.reshape(Bn * Tn, Cn)   # collapse batch: one grid step handles everything

    out = pl.pallas_call(
        block_kernel,
        out_shape=jax.ShapeDtypeStruct((Bn * Tn, Cn), x.dtype),
        grid_spec=pltpu.PrefetchScalarGridSpec(
            num_scalar_prefetch=0,
            grid=(1,),
            in_specs=[
                pl.BlockSpec((Bn * Tn, Cn), lambda i: (0, 0)),
                pl.BlockSpec(wblob.shape, lambda i: (0, 0)),
                pl.BlockSpec(pblob.shape, lambda i: (0, 0)),
            ],
            out_specs=pl.BlockSpec((Bn * Tn, Cn), lambda i: (0, 0)),
        ),
        compiler_params=pltpu.CompilerParams(
            dimension_semantics=("arbitrary",)),
    )(xf, wblob, pblob)
    return out.reshape(Bn, Tn, Cn)


def init_params(key):
    """Deterministic synthetic parameters. Linear weights stored as (in, out)."""
    ks = jax.random.split(key, 12)
    s = 0.05
    return {
        "g1":  jnp.ones((1, C), jnp.float32),
        "be1": jnp.zeros((1, C), jnp.float32),
        "wq":  s * jax.random.normal(ks[0], (C, C), jnp.float32),
        "bq":  s * jax.random.normal(ks[1], (1, C), jnp.float32),
        "wk":  s * jax.random.normal(ks[2], (C, C), jnp.float32),
        "bk":  s * jax.random.normal(ks[3], (1, C), jnp.float32),
        "wv":  s * jax.random.normal(ks[4], (C, C), jnp.float32),
        "bv":  s * jax.random.normal(ks[5], (1, C), jnp.float32),
        "wp":  s * jax.random.normal(ks[6], (C, C), jnp.float32),
        "bp":  s * jax.random.normal(ks[7], (1, C), jnp.float32),
        "g2":  jnp.ones((1, C), jnp.float32),
        "be2": jnp.zeros((1, C), jnp.float32),
        "w1":  s * jax.random.normal(ks[8], (C, HID), jnp.float32),
        "b1":  s * jax.random.normal(ks[9], (1, HID), jnp.float32),
        "w2":  s * jax.random.normal(ks[10], (HID, C), jnp.float32),
        "b2":  s * jax.random.normal(ks[11], (1, C), jnp.float32),
    }


def reference_block(x, p):
    """Pure-JAX reference mirroring the PyTorch forward (eval mode)."""
    Tn = x.shape[1]

    def ln(z, g, b):
        mu = jnp.mean(z, axis=-1, keepdims=True)
        var = jnp.mean((z - mu) ** 2, axis=-1, keepdims=True)
        return (z - mu) * lax.rsqrt(var + EPS) * g + b

    h = ln(x, p["g1"][0], p["be1"][0])
    q = h @ p["wq"] + p["bq"][0]
    k = h @ p["wk"] + p["bk"][0]
    v = h @ p["wv"] + p["bv"][0]
    tril = jnp.tril(jnp.ones((Tn, Tn), bool))
    outs = []
    for hh in range(N_HEAD):
        sl = slice(hh * HEAD, (hh + 1) * HEAD)
        wei = jnp.einsum("btd,bsd->bts", q[..., sl], k[..., sl]) * HEAD ** (-0.5)
        wei = jnp.where(tril, wei, -jnp.inf)
        wei = jax.nn.softmax(wei, axis=-1)
        outs.append(jnp.einsum("bts,bsd->btd", wei, v[..., sl]))
    sa = jnp.concatenate(outs, axis=-1) @ p["wp"] + p["bp"][0]
    x1 = x + sa
    h2 = ln(x1, p["g2"][0], p["be2"][0])
    ff = jnp.maximum(h2 @ p["w1"] + p["b1"][0], 0.0) @ p["w2"] + p["b2"][0]
    return x1 + ff


if __name__ == "__main__":
    key = jax.random.PRNGKey(0)
    kx, kp = jax.random.split(key)
    x = jax.random.normal(kx, (B, T, C), jnp.float32)
    params = init_params(kp)
    wblob, pblob = pack_params(params)

    out = transformer_block(x, wblob, pblob)
    out = jax.block_until_ready(out)

    ref = jax.block_until_ready(reference_block(x, params))
    assert out.shape == (B, T, C)
    # tolerance slightly loosened vs f32-exact to cover the EUP approximate
    # reciprocal used in the in-kernel softmax (per perf review).
    np.testing.assert_allclose(np.asarray(out), np.asarray(ref), rtol=2e-3, atol=2e-3)
    print("KERNEL_OK")
</pallas_src>

<mosaic_0001>
module attributes {stable_mosaic.version = 11 : i64} {
  func.func @block_kernel(%arg0: i32, %arg1: memref<16x32xf32, #tpu.memory_space<vmem>>, %arg2: memref<32x384xf32, #tpu.memory_space<vmem>>, %arg3: memref<4x128xf32, #tpu.memory_space<vmem>>, %arg4: memref<16x32xf32, #tpu.memory_space<vmem>>) attributes {dimension_semantics = [#tpu.dimension_semantics<arbitrary>], iteration_bounds = array<i64: 1>, scalar_prefetch = 0 : i64, scratch_operands = 0 : i64, tpu.core_type = #tpu.core_type<tc>, window_params = [{pipeline_mode = #tpu.pipeline_mode<synchronous>, transform_indices = @transform_0, window_bounds = array<i64: 16, 32>}, {pipeline_mode = #tpu.pipeline_mode<synchronous>, transform_indices = @transform_1, window_bounds = array<i64: 32, 384>}, {pipeline_mode = #tpu.pipeline_mode<synchronous>, transform_indices = @transform_2, window_bounds = array<i64: 4, 128>}, {pipeline_mode = #tpu.pipeline_mode<synchronous>, transform_indices = @transform_3, window_bounds = array<i64: 16, 32>}]} {
    %c0 = arith.constant 0 : index
    %c0_0 = arith.constant 0 : index
    %0 = vector.load %arg1[%c0, %c0_0] : memref<16x32xf32, #tpu.memory_space<vmem>>, vector<16x32xf32>
    %c0_1 = arith.constant 0 : index
    %c0_2 = arith.constant 0 : index
    %1 = vector.load %arg2[%c0_1, %c0_2] : memref<32x384xf32, #tpu.memory_space<vmem>>, vector<32x384xf32>
    %c0_3 = arith.constant 0 : index
    %c0_4 = arith.constant 0 : index
    %2 = vector.load %arg3[%c0_3, %c0_4] : memref<4x128xf32, #tpu.memory_space<vmem>>, vector<4x128xf32>
    %3 = vector.extract_strided_slice %1 {offsets = [0, 0], sizes = [32, 96], strides = [1, 1]} : vector<32x384xf32> to vector<32x96xf32>
    %4 = vector.extract_strided_slice %1 {offsets = [0, 96], sizes = [32, 32], strides = [1, 1]} : vector<32x384xf32> to vector<32x32xf32>
    %5 = vector.extract_strided_slice %1 {offsets = [0, 128], sizes = [32, 128], strides = [1, 1]} : vector<32x384xf32> to vector<32x128xf32>
    %6 = vector.extract_strided_slice %1 {offsets = [0, 256], sizes = [32, 128], strides = [1, 1]} : vector<32x384xf32> to vector<32x128xf32>
    %7 = vector.extract_strided_slice %2 {offsets = [0, 0], sizes = [1, 32], strides = [1, 1]} : vector<4x128xf32> to vector<1x32xf32>
    %8 = vector.extract_strided_slice %2 {offsets = [0, 32], sizes = [1, 32], strides = [1, 1]} : vector<4x128xf32> to vector<1x32xf32>
    %9 = vector.extract_strided_slice %2 {offsets = [0, 64], sizes = [1, 32], strides = [1, 1]} : vector<4x128xf32> to vector<1x32xf32>
    %10 = vector.extract_strided_slice %2 {offsets = [0, 96], sizes = [1, 32], strides = [1, 1]} : vector<4x128xf32> to vector<1x32xf32>
    %11 = vector.extract_strided_slice %2 {offsets = [1, 0], sizes = [1, 96], strides = [1, 1]} : vector<4x128xf32> to vector<1x96xf32>
    %12 = vector.extract_strided_slice %2 {offsets = [1, 96], sizes = [1, 32], strides = [1, 1]} : vector<4x128xf32> to vector<1x32xf32>
    %13 = vector.extract_strided_slice %2 {offsets = [2, 0], sizes = [1, 128], strides = [1, 1]} : vector<4x128xf32> to vector<1x128xf32>
    %14 = vector.extract_strided_slice %2 {offsets = [3, 0], sizes = [1, 32], strides = [1, 1]} : vector<4x128xf32> to vector<1x32xf32>
    %cst = arith.constant dense<0.000000e+00> : vector<16xf32>
    %15 = vector.multi_reduction <add>, %0, %cst [1] : vector<16x32xf32> to vector<16xf32>
    %16 = vector.shape_cast %15 : vector<16xf32> to vector<16x1xf32>
    %cst_5 = arith.constant 3.200000e+01 : f32
    %17 = vector.broadcast %cst_5 : f32 to vector<16x1xf32>
    %18 = arith.divf %16, %17 : vector<16x1xf32>
    %19 = vector.broadcast %18 : vector<16x1xf32> to vector<16x32xf32>
    %20 = arith.subf %0, %19 : vector<16x32xf32>
    %21 = arith.mulf %20, %20 : vector<16x32xf32>
    %cst_6 = arith.constant dense<0.000000e+00> : vector<16xf32>
    %22 = vector.multi_reduction <add>, %21, %cst_6 [1] : vector<16x32xf32> to vector<16xf32>
    %23 = vector.shape_cast %22 : vector<16xf32> to vector<16x1xf32>
    %cst_7 = arith.constant 3.200000e+01 : f32
    %24 = vector.broadcast %cst_7 : f32 to vector<16x1xf32>
    %25 = arith.divf %23, %24 : vector<16x1xf32>
    %26 = vector.broadcast %18 : vector<16x1xf32> to vector<16x32xf32>
    %27 = arith.subf %0, %26 : vector<16x32xf32>
    %cst_8 = arith.constant 9.99999974E-6 : f32
    %28 = vector.broadcast %cst_8 : f32 to vector<16x1xf32>
    %29 = arith.addf %25, %28 : vector<16x1xf32>
    %30 = math.rsqrt %29 : vector<16x1xf32>
    %31 = vector.broadcast %30 : vector<16x1xf32> to vector<16x32xf32>
    %32 = arith.mulf %27, %31 : vector<16x32xf32>
    %33 = vector.broadcast %7 : vector<1x32xf32> to vector<16x32xf32>
    %34 = arith.mulf %32, %33 : vector<16x32xf32>
    %35 = vector.broadcast %8 : vector<1x32xf32> to vector<16x32xf32>
    %36 = arith.addf %34, %35 : vector<16x32xf32>
    %cst_9 = arith.constant dense<0.000000e+00> : vector<16x96xf32>
    %37 = tpu.matmul %36, %3, %cst_9 {dimension_numbers = #tpu.dot_dimension_numbers<[1], [0], [0], [1], [0, 0, 1, 1], [], []>} : vector<16x32xf32>, vector<32x96xf32>, vector<16x96xf32> -> vector<16x96xf32>
    %38 = vector.broadcast %11 : vector<1x96xf32> to vector<16x96xf32>
    %39 = arith.addf %37, %38 : vector<16x96xf32>
    %40 = vector.extract_strided_slice %39 {offsets = [0, 0], sizes = [16, 32], strides = [1, 1]} : vector<16x96xf32> to vector<16x32xf32>
    %41 = vector.extract_strided_slice %39 {offsets = [0, 32], sizes = [16, 32], strides = [1, 1]} : vector<16x96xf32> to vector<16x32xf32>
    %42 = vector.extract_strided_slice %39 {offsets = [0, 64], sizes = [16, 32], strides = [1, 1]} : vector<16x96xf32> to vector<16x32xf32>
    %43 = vector.shape_cast %40 : vector<16x32xf32> to vector<2x8x4x8xf32>
    %44 = tpu.transpose %43, [0, 2, 1, 3] : vector<2x8x4x8xf32> -> vector<2x4x8x8xf32>
    %45 = vector.shape_cast %44 : vector<2x4x8x8xf32> to vector<8x8x8xf32>
    %46 = vector.shape_cast %41 : vector<16x32xf32> to vector<2x8x4x8xf32>
    %47 = tpu.transpose %46, [0, 2, 1, 3] : vector<2x8x4x8xf32> -> vector<2x4x8x8xf32>
    %48 = vector.shape_cast %47 : vector<2x4x8x8xf32> to vector<8x8x8xf32>
    %49 = vector.shape_cast %42 : vector<16x32xf32> to vector<2x8x4x8xf32>
    %50 = tpu.transpose %49, [0, 2, 1, 3] : vector<2x8x4x8xf32> -> vector<2x4x8x8xf32>
    %51 = vector.shape_cast %50 : vector<2x4x8x8xf32> to vector<8x8x8xf32>
    "tpu.trace_start"() <{level = 10 : i32, message = "ztd,zsd->zts"}> : () -> ()
    %cst_10 = arith.constant dense<0.000000e+00> : vector<8x8x8xf32>
    %52 = tpu.matmul %45, %48, %cst_10 {dimension_numbers = #tpu.dot_dimension_numbers<[2], [2], [1], [1], [0, 0, 0, 1, 1, 1], [0], [0]>} : vector<8x8x8xf32>, vector<8x8x8xf32>, vector<8x8x8xf32> -> vector<8x8x8xf32>
    "tpu.trace_stop"() : () -> ()
    %cst_11 = arith.constant 0.353553385 : f32
    %53 = vector.broadcast %cst_11 : f32 to vector<8x8x8xf32>
    %54 = arith.mulf %52, %53 : vector<8x8x8xf32>
    %55 = tpu.iota {dimensions = array<i32: 1>} : vector<8x8x8xi32>
    %56 = tpu.iota {dimensions = array<i32: 2>} : vector<8x8x8xi32>
    %57 = arith.cmpi sge, %55, %56 : vector<8x8x8xi32>
    %cst_12 = arith.constant 0xFF800000 : f32
    %58 = vector.broadcast %cst_12 : f32 to vector<8x8x8xf32>
    %59 = arith.select %57, %54, %58 : vector<8x8x8xi1>, vector<8x8x8xf32>
    %cst_13 = arith.constant dense<0xFF800000> : vector<8x8xf32>
    %60 = vector.multi_reduction <maximumf>, %59, %cst_13 [2] : vector<8x8x8xf32> to vector<8x8xf32>
    %61 = vector.shape_cast %60 : vector<8x8xf32> to vector<8x8x1xf32>
    %62 = vector.broadcast %61 : vector<8x8x1xf32> to vector<8x8x8xf32>
    %63 = arith.subf %59, %62 : vector<8x8x8xf32>
    %64 = math.exp %63 : vector<8x8x8xf32>
    %cst_14 = arith.constant dense<0.000000e+00> : vector<8x8xf32>
    %65 = vector.multi_reduction <add>, %64, %cst_14 [2] : vector<8x8x8xf32> to vector<8x8xf32>
    %66 = vector.shape_cast %65 : vector<8x8xf32> to vector<8x8x1xf32>
    %67 = tpu.reciprocal %66 {approx = true} : vector<8x8x1xf32> -> vector<8x8x1xf32>
    %68 = vector.broadcast %67 : vector<8x8x1xf32> to vector<8x8x8xf32>
    %69 = arith.mulf %64, %68 : vector<8x8x8xf32>
    "tpu.trace_start"() <{level = 10 : i32, message = "zts,zsd->ztd"}> : () -> ()
    %cst_15 = arith.constant dense<0.000000e+00> : vector<8x8x8xf32>
    %70 = tpu.matmul %69, %51, %cst_15 {dimension_numbers = #tpu.dot_dimension_numbers<[2], [1], [1], [2], [0, 0, 0, 1, 1, 2], [0], [0]>} : vector<8x8x8xf32>, vector<8x8x8xf32>, vector<8x8x8xf32> -> vector<8x8x8xf32>
    "tpu.trace_stop"() : () -> ()
    %71 = vector.shape_cast %70 : vector<8x8x8xf32> to vector<2x4x8x8xf32>
    %72 = tpu.transpose %71, [0, 2, 1, 3] : vector<2x4x8x8xf32> -> vector<2x8x4x8xf32>
    %73 = vector.shape_cast %72 : vector<2x8x4x8xf32> to vector<16x32xf32>
    %cst_16 = arith.constant dense<0.000000e+00> : vector<16x32xf32>
    %74 = tpu.matmul %73, %4, %cst_16 {dimension_numbers = #tpu.dot_dimension_numbers<[1], [0], [0], [1], [0, 0, 1, 1], [], []>} : vector<16x32xf32>, vector<32x32xf32>, vector<16x32xf32> -> vector<16x32xf32>
    %75 = vector.broadcast %12 : vector<1x32xf32> to vector<16x32xf32>
    %76 = arith.addf %74, %75 : vector<16x32xf32>
    %77 = arith.addf %0, %76 : vector<16x32xf32>
    %cst_17 = arith.constant dense<0.000000e+00> : vector<16xf32>
    %78 = vector.multi_reduction <add>, %77, %cst_17 [1] : vector<16x32xf32> to vector<16xf32>
    %79 = vector.shape_cast %78 : vector<16xf32> to vector<16x1xf32>
    %cst_18 = arith.constant 3.200000e+01 : f32
    %80 = vector.broadcast %cst_18 : f32 to vector<16x1xf32>
    %81 = arith.divf %79, %80 : vector<16x1xf32>
    %82 = vector.broadcast %81 : vector<16x1xf32> to vector<16x32xf32>
    %83 = arith.subf %77, %82 : vector<16x32xf32>
    %84 = arith.mulf %83, %83 : vector<16x32xf32>
    %cst_19 = arith.constant dense<0.000000e+00> : vector<16xf32>
    %85 = vector.multi_reduction <add>, %84, %cst_19 [1] : vector<16x32xf32> to vector<16xf32>
    %86 = vector.shape_cast %85 : vector<16xf32> to vector<16x1xf32>
    %cst_20 = arith.constant 3.200000e+01 : f32
    %87 = vector.broadcast %cst_20 : f32 to vector<16x1xf32>
    %88 = arith.divf %86, %87 : vector<16x1xf32>
    %89 = vector.broadcast %81 : vector<16x1xf32> to vector<16x32xf32>
    %90 = arith.subf %77, %89 : vector<16x32xf32>
    %cst_21 = arith.constant 9.99999974E-6 : f32
    %91 = vector.broadcast %cst_21 : f32 to vector<16x1xf32>
    %92 = arith.addf %88, %91 : vector<16x1xf32>
    %93 = math.rsqrt %92 : vector<16x1xf32>
    %94 = vector.broadcast %93 : vector<16x1xf32> to vector<16x32xf32>
    %95 = arith.mulf %90, %94 : vector<16x32xf32>
    %96 = vector.broadcast %9 : vector<1x32xf32> to vector<16x32xf32>
    %97 = arith.mulf %95, %96 : vector<16x32xf32>
    %98 = vector.broadcast %10 : vector<1x32xf32> to vector<16x32xf32>
    %99 = arith.addf %97, %98 : vector<16x32xf32>
    %cst_22 = arith.constant dense<0.000000e+00> : vector<16x128xf32>
    %100 = tpu.matmul %99, %5, %cst_22 {dimension_numbers = #tpu.dot_dimension_numbers<[1], [0], [0], [1], [0, 0, 1, 1], [], []>} : vector<16x32xf32>, vector<32x128xf32>, vector<16x128xf32> -> vector<16x128xf32>
    %101 = vector.broadcast %13 : vector<1x128xf32> to vector<16x128xf32>
    %102 = arith.addf %100, %101 : vector<16x128xf32>
    %cst_23 = arith.constant 0.000000e+00 : f32
    %103 = vector.broadcast %cst_23 : f32 to vector<16x128xf32>
    %104 = arith.maximumf %102, %103 : vector<16x128xf32>
    %cst_24 = arith.constant dense<0.000000e+00> : vector<16x32xf32>
    %105 = tpu.matmul %104, %6, %cst_24 {dimension_numbers = #tpu.dot_dimension_numbers<[1], [1], [0], [0], [0, 0, 1, 0], [], []>} : vector<16x128xf32>, vector<32x128xf32>, vector<16x32xf32> -> vector<16x32xf32>
    %106 = vector.broadcast %14 : vector<1x32xf32> to vector<16x32xf32>
    %107 = arith.addf %105, %106 : vector<16x32xf32>
    %108 = arith.addf %77, %107 : vector<16x32xf32>
    %c0_25 = arith.constant 0 : index
    %c0_26 = arith.constant 0 : index
    %109 = vector.load %arg4[%c0_25, %c0_26] : memref<16x32xf32, #tpu.memory_space<vmem>>, vector<16x32xf32>
    tpu.vector_store %arg4[%c0_25, %c0_26], %108 {strides = array<i32>} : memref<16x32xf32, #tpu.memory_space<vmem>>, vector<16x32xf32>,
    return
  }
  func.func @transform_0(%arg0: i32) -> (i32, i32) {
    %c0_i32 = arith.constant 0 : i32
    %c0_i32_0 = arith.constant 0 : i32
    %c0_i32_1 = arith.constant 0 : i32
    return %c0_i32, %c0_i32_0 : i32, i32
  }
  func.func @transform_1(%arg0: i32) -> (i32, i32) {
    %c0_i32 = arith.constant 0 : i32
    %c0_i32_0 = arith.constant 0 : i32
    %c0_i32_1 = arith.constant 0 : i32
    return %c0_i32, %c0_i32_0 : i32, i32
  }
  func.func @transform_2(%arg0: i32) -> (i32, i32) {
    %c0_i32 = arith.constant 0 : i32
    %c0_i32_0 = arith.constant 0 : i32
    %c0_i32_1 = arith.constant 0 : i32
    return %c0_i32, %c0_i32_0 : i32, i32
  }
  func.func @transform_3(%arg0: i32) -> (i32, i32) {
    %c0_i32 = arith.constant 0 : i32
    %c0_i32_0 = arith.constant 0 : i32
    %c0_i32_1 = arith.constant 0 : i32
    return %c0_i32, %c0_i32_0 : i32, i32
  }
}

</mosaic_0001>

<bundles_post_ra>
// kernel: tpu_custom_call.1
= control target key start
LH: loop header
LB: loop body
LE: loop exit
PB: predicated region body
PF: predicated region fallthrough
CT: control target
= control target key end

     0   :  { %8 = vsyncpa [#allocation3], 0  ;;  %s2716_s0 = inlined_call_operand.hbm [shape: f32[16,32], index: 0, kind: input, shape index: {}]   ;;  %s2717_s1 = inlined_call_operand.hbm [shape: f32[32,384], index: 1, kind: input, shape index: {}]   ;;  %s2718_s2 = inlined_call_operand.hbm [shape: f32[4,128], index: 2, kind: input, shape index: {}]   ;;  %s2719_s3 = inlined_call_operand.hbm [shape: f32[16,32], index: 3, kind: output, shape index: {}]  }
   0x1   :  { %9 = vsyncpa [#allocation6], 0  ;;  %s28_s14 = sshll.u32 %s2717_s1, 4  ;;  %s29_s14 = int_to_ptr.hbm [resolvable:$true] %s28_s14 }
   0x2   :  { %10 = vsyncpa [#allocation4], 0  ;;  %s2059_s15 = smov [#allocation5]   ;;  %s15_s19 = sshll.u32 %s2716_s0, 4  ;;  %s16_s19 = int_to_ptr.hbm [resolvable:$true] %s15_s19 }
   0x3   :  { %s30_s16 = sshll.u32 %s2059_s15, 4  ;;  %s2060_s20 = smov 384   ;;  %s31_s16 = int_to_ptr.vmem [resolvable:$true] %s30_s16 }
   0x4   :  { %s2061_s21 = smov 24   ;;  %s2062_s22 = smov [#allocation2]  }
   0x5   :  { %36 = dma.hbm_to_vmem [thread:$0]  %s29_s14, 1536, %s31_s16, [#allocation6], %s2060_s20, %s2060_s20, %s2061_s21  }
   0x6   :  { %s17_s23 = sshll.u32 %s2062_s22, 4  ;;  %s2063_s24 = smov 128   ;;  %s18_s23 = int_to_ptr.vmem [resolvable:$true] %s17_s23 }
   0x7   :  { %s2064_s25 = smov 8   ;;  %s42_s27 = sshll.u32 %s2718_s2, 4  ;;  %s43_s27 = int_to_ptr.hbm [resolvable:$true] %s42_s27 }
   0x8   :  { %23 = dma.hbm_to_vmem [thread:$0]  %s16_s19, 256, %s18_s23, [#allocation3], %s2063_s24, %s2063_s24, %s2064_s25  }
   0x9   :  { %s2065_s0 = smov [#allocation7]  }
   0xa   :  { %s44_s28 = sshll.u32 %s2065_s0, 4  ;;  %s45_s28 = int_to_ptr.vmem [resolvable:$true] %s44_s28 }
   0xb   :  { %47 = dma.hbm_to_vmem [thread:$0]  %s43_s27, 64, %s45_s28, [#allocation6]  }
   0xc   :  { %2053 = dma.done.wait [#allocation3], 256  }
   0xd   :  { %2054 = vsyncadd [#allocation3], 4294967040 }
   0xe   :  { %2055 = dma.done.wait [#allocation6], 1600  }
   0xf   :  { %2056 = vsyncadd [#allocation6], 4294965696  ;;  %vm75_vm0 = vcmask 261120   ;;  %v60_v0 = vld [vmem:[#allocation2] sm:$0xff]  ;;  %v61_v2 = vld [vmem:[#allocation2 + $0x8] sm:$0xff]  ;;  %v2066_v4 = vmov 32.0  }
  0x10   :  { %v76_v1 = vsel %vm75_vm0, %v60_v0, 0.0  ;;  %v79_v3 = vsel %vm75_vm0, %v61_v2, 0.0  ;;  %1912 = vrcp.f32 %v2066_v4  ;;  %v2112_v7 = vld [vmem:[#allocation7] sm:$0xf]  ;;  %s2067_s2 = smov 96   ;;  %v2125_v23 = vld [vmem:[#allocation5 + $0x48] sm:$0xff] }
  0x11   :  { %77 = vadd.xlane.f32.xlu0 %v76_v1  ;;  %v2115_v8 = vperm.slane %v2112_v7, 0  ;;  %155 = vmatpush.msra.mxu0 %v2125_v23  ;;  %v2128_v24 = vld [vmem:[#allocation5 + $0x30] sm:$0xff]  ;;  %v2131_v25 = vld [vmem:[#allocation5 + $0x18] sm:$0xff]  ;;  %v2134_v26 = vld [vmem:[#allocation5] sm:$0xff]  ;;  %v2148_v56 = vperm.slane %v2112_v7, 1  ;;  %s2068_s29 = smov 112  }
  0x12   :  { %v1902_v27 = vpack.i.bf16 %v2128_v24, %v2125_v23  ;;  %v1907_v31 = vpack.i.bf16 %v2134_v26, %v2131_v25  ;;  %s2069_s30 = smov 120   ;;  %s2070_s4 = smov 104   ;;  %v2071_v63 = vmov 1983009808   ;;  %vm187_vm8 = vcmask 1047556  }
  0x13   :  { %131 = vrot.lane.b32.xlu2 %v2115_v8, %s2067_s2  ;;  %156 = vmatpush.msra.mxu0 %v2128_v24  ;;  %s2073_s5 = smov 64   ;;  %vm895_vm9 = vcmask 64512   ;;  %s2074_s6 = smov 32   ;;  %vm1643_vm11 = vcmask 130048   ;;  %vm1646_vm12 = vcmask 195584  }
  0x14   :  { %s2075_s7 = smov 16   ;;  %s2076_s8 = smov [#allocation8]  }
  0x15   :  { %157 = vmatpush.msra.mxu0 %v2131_v25  ;;  %s1818_s9 = sshll.u32 %s2076_s8, 4  ;;  %s1820_s12 = sshll.u32 %s2719_s3, 4  ;;  %s1819_s9 = int_to_ptr.vmem [resolvable:$true] %s1818_s9  ;;  %s1821_s12 = int_to_ptr.hbm [resolvable:$true] %s1820_s12 }
  0x16   :  { %v1913_v5 = vpop.eup %1912 }
  0x17   :  { %v83_v6 = vmul.f32 32.0, %v1913_v5  ;;  %vm87_vm1 = vweird.f32 %v1913_v5  ;;  %158 = vmatpush.msra.mxu0 %v2134_v26 }
  0x19   :  { %80 = vadd.xlane.f32.xlu0 %v79_v3  ;;  %v84_v9 = vsub.f32 1.0, %v83_v6 }
  0x1b   :  { %v85_v10 = vmul.f32 %v1913_v5, %v84_v9  ;;  %v2072_v9 = vmov 1934713408  }
  0x1d   :  { %v86_v11 = vadd.f32 %v1913_v5, %v85_v10  ;;  %v216_v10 = vunpack.c.l.s4 %v2072_v9 }
  0x1f   :  { %v2119_v12 = vsel %vm87_vm1, %v1913_v5, %v86_v11 }
  0x6d   :  { %v132_v47 = vpop.permute.xlu2 %131 }
  0x84   :  { %v78_v13 = vpop.xlane.xlu0 %77 }
  0x85   :  { %v89_v14 = vmul.f32 %v2119_v12, %v78_v13 }
  0x87   :  { %v91_v15 = vsub.f32 %v60_v0, %v89_v14  ;;  %v192_v0 = vunpack.c.l.s4 %v2071_v63 }
  0x89   :  { %v93_v16 = vmul.f32 %v91_v15, %v91_v15 }
  0x8b   :  { %v95_v17 = vsel %vm75_vm0, %v93_v16, 0.0 }
  0x8c   :  { %96 = vadd.xlane.f32.xlu1 %v95_v17  ;;  %v81_v18 = vpop.xlane.xlu0 %80  ;;  %v2187_v17 = vunpack.c.0.s8 %v216_v10 }
  0x8d   :  { %v90_v19 = vmul.f32 %v2119_v12, %v81_v18 }
  0x8f   :  { %v92_v20 = vsub.f32 %v61_v2, %v90_v19  ;;  %v2173_v2 = vunpack.c.0.s8 %v192_v0 }
  0x91   :  { %v94_v21 = vmul.f32 %v92_v20, %v92_v20 }
  0x93   :  { %v98_v22 = vsel %vm75_vm0, %v94_v21, 0.0 }
  0x94   :  { %99 = vadd.xlane.f32.xlu1 %v98_v22 }
  0xff   :  { %v97_v28 = vpop.xlane.xlu1 %96 }
 0x100   :  { %v101_v29 = vmul.f32 %v97_v28, %v2119_v12 }
 0x102   :  { %v103_v30 = vadd.f32 1e-05, %v101_v29 }
 0x104   :  { %1914 = vrsqrt.f32 %v103_v30  ;;  %vm111_vm3 = vweird.f32 %v103_v30 }
 0x107   :  { %v100_v32 = vpop.xlane.xlu1 %99 }
 0x108   :  { %v102_v33 = vmul.f32 %v100_v32, %v2119_v12 }
 0x10a   :  { %v1915_v34 = vpop.eup %1914  ;;  %v104_v35 = vadd.f32 1e-05, %v102_v33 }
 0x10b   :  { %v106_v36 = vmul.f32 %v1915_v34, %v103_v30  ;;  %vm112_vm2 = vweird.f32 %v1915_v34 }
 0x10c   :  { %1916 = vrsqrt.f32 %v104_v35  ;;  %vm113_vm4 = vmor %vm111_vm3, %vm112_vm2  ;;  %vm121_vm5 = vweird.f32 %v104_v35 }
 0x10d   :  { %v107_v37 = vmul.f32 %v1915_v34, %v106_v36 }
 0x10f   :  { %v108_v38 = vmul.f32 0.5, %v107_v37 }
 0x111   :  { %v109_v39 = vsub.f32 1.5, %v108_v38 }
 0x112   :  { %v1917_v40 = vpop.eup %1916 }
 0x113   :  { %v110_v41 = vmul.f32 %v1915_v34, %v109_v39  ;;  %v116_v42 = vmul.f32 %v1917_v40, %v104_v35  ;;  %vm122_vm6 = vweird.f32 %v1917_v40 }
 0x114   :  { %vm123_vm7 = vmor %vm121_vm5, %vm122_vm6 }
 0x115   :  { %v117_v43 = vmul.f32 %v1917_v40, %v116_v42  ;;  %v114_v44 = vsel %vm113_vm4, %v1915_v34, %v110_v41 }
 0x116   :  { %v125_v45 = vmul.f32 %v114_v44, %v91_v15 }
 0x117   :  { %v118_v46 = vmul.f32 0.5, %v117_v43 }
 0x118   :  { %v128_v48 = vmul.f32 %v2115_v8, %v125_v45 }
 0x119   :  { %v119_v49 = vsub.f32 1.5, %v118_v46 }
 0x11a   :  { %v134_v50 = vadd.f32 %v132_v47, %v128_v48 }
 0x11b   :  { %v120_v51 = vmul.f32 %v1917_v40, %v119_v49 }
 0x11c   :  { %1834 = vmatmul.msk.f32.vlgmr.msra.gmra.mxu0 %vm75_vm0, %v134_v50 }
 0x11d   :  { %v124_v52 = vsel %vm123_vm7, %v1917_v40, %v120_v51 }
 0x11e   :  { %v126_v53 = vmul.f32 %v124_v52, %v92_v20 }
 0x120   :  { %v129_v54 = vmul.f32 %v2115_v8, %v126_v53 }
 0x122   :  { %v135_v55 = vadd.f32 %v132_v47, %v129_v54 }
 0x124   :  { %1835 = vmatmul.msk.f32.gmra.mxu0 %vm75_vm0, %v135_v55 }
 0x199   :  { %v160_v57 = vpop.f32.mrf.mxu0 }
 0x19a   :  { %v2151_v58 = vadd.f32 %v160_v57, %v2148_v56 }
 0x19c   :  { %174 = vrot.lane.b32.xlu0 %v2151_v58, %s2068_s29  ;;  %168 = vrot.lane.b32.xlu2 %v2151_v58, %s2069_s30  ;;  %v189_v14 = vrot.slane %v2151_v58, 4 }
 0x19d   :  { %180 = vrot.lane.b32.xlu1 %v2151_v58, %s2070_s4 }
 0x1a1   :  { %v163_v59 = vpop.f32.mrf.mxu0 }
 0x1a2   :  { %v2157_v60 = vadd.f32 %v163_v59, %v2148_v56 }
 0x1a4   :  { %407 = vrot.lane.b32.xlu0 %v2151_v58, %s2067_s2  ;;  %170 = vrot.lane.b32.xlu2 %v2157_v60, %s2069_s30  ;;  %v245_v1 = vrot.slane %v2157_v60, 4 }
 0x1ac   :  { %176 = vrot.lane.b32.xlu2 %v2157_v60, %s2068_s29 }
 0x1b4   :  { %182 = vrot.lane.b32.xlu2 %v2157_v60, %s2070_s4 }
 0x1f6   :  { %v2164_v61 = vpop.permute.xlu2 %168 }
 0x1f7   :  { %411 = vrot.lane.b32.xlu2 %v2164_v61, %s2067_s2  ;;  %v201_v15 = vrot.slane %v2164_v61, 4  ;;  %v1882_v20 = vpack.i.bf16 %v2164_v61, %v2151_v58 }
 0x1fe   :  { %v2168_v62 = vpop.permute.xlu2 %170 }
 0x1ff   :  { %409 = vrot.lane.b32.xlu2 %v2157_v60, %s2067_s2  ;;  %v257_v11 = vrot.slane %v2168_v62, 4 }
 0x206   :  { %v2175_v3 = vpop.permute.xlu2 %176 }
 0x207   :  { %v243_v4 = vrot.slane %v2175_v3, 4  ;;  %v246_v5 = vsel %vm187_vm8, %v2175_v3, %v245_v1 }
 0x208   :  { %v254_v7 = vperm.slane %v246_v5, %v2173_v2 }
 0x209   :  { %v244_v6 = vsel %vm187_vm8, %v243_v4, %v2157_v60 }
 0x20a   :  { %v250_v13 = vperm.slane %v244_v6, %v2173_v2  ;;  %v281_v16 = vrot.slane %v254_v7, 4 }
 0x20c   :  { %v269_v36 = vrot.slane %v250_v13, 4 }
 0x20e   :  { %v2189_v18 = vpop.permute.xlu2 %182  ;;  %v2191_v19 = vpop.permute.xlu0 %174 }
 0x20f   :  { %v255_v21 = vrot.slane %v2189_v18, 4  ;;  %v258_v22 = vsel %vm187_vm8, %v2189_v18, %v257_v11  ;;  %v2198_v28 = vpop.permute.xlu1 %180  ;;  %v186_v29 = vrot.slane %v2191_v19, 4  ;;  %v190_v30 = vsel %vm187_vm8, %v2191_v19, %v189_v14  ;;  %421 = vrot.lane.b32.xlu2 %v2189_v18, %s2067_s2  ;;  %415 = vrot.lane.b32.xlu1 %v2191_v19, %s2067_s2 }
 0x210   :  { %v266_v32 = vperm.slane %v258_v22, %v2173_v2  ;;  %v199_v33 = vrot.slane %v2198_v28, 4  ;;  %v202_v34 = vsel %vm187_vm8, %v2198_v28, %v201_v15  ;;  %v198_v35 = vperm.slane %v190_v30, %v2173_v2  ;;  %419 = vrot.lane.b32.xlu0 %v2198_v28, %s2067_s2 }
 0x211   :  { %v256_v37 = vsel %vm187_vm8, %v255_v21, %v2168_v62  ;;  %v210_v38 = vperm.slane %v202_v34, %v2173_v2  ;;  %v188_v39 = vsel %vm187_vm8, %v186_v29, %v2151_v58 }
 0x212   :  { %v262_v40 = vperm.slane %v256_v37, %v2173_v2  ;;  %v279_v41 = vrot.slane %v266_v32, 4  ;;  %v282_v42 = vsel %vm187_vm8, %v266_v32, %v281_v16  ;;  %v200_v43 = vsel %vm187_vm8, %v199_v33, %v2164_v61 }
 0x213   :  { %v290_v44 = vperm.slane %v282_v42, %v2187_v17  ;;  %v206_v45 = vperm.slane %v200_v43, %v2173_v2  ;;  %v223_v46 = vrot.slane %v210_v38, 4  ;;  %v194_v47 = vperm.slane %v188_v39, %v2173_v2 }
 0x214   :  { %v267_v48 = vrot.slane %v262_v40, 4  ;;  %v270_v49 = vsel %vm187_vm8, %v262_v40, %v269_v36  ;;  %v280_v50 = vsel %vm187_vm8, %v279_v41, %v254_v7  ;;  %v225_v51 = vrot.slane %v198_v35, 4 }
 0x215   :  { %v278_v52 = vperm.slane %v270_v49, %v2187_v17  ;;  %v286_v53 = vperm.slane %v280_v50, %v2187_v17  ;;  %v297_v54 = vrot.slane %v290_v44, 4  ;;  %v211_v55 = vrot.slane %v206_v45, 4 }
 0x216   :  { %v268_v57 = vsel %vm187_vm8, %v267_v48, %v250_v13  ;;  %v213_v58 = vrot.slane %v194_v47, 4  ;;  %v224_v59 = vsel %vm187_vm8, %v223_v46, %v198_v35  ;;  %v226_v61 = vsel %vm187_vm8, %v210_v38, %v225_v51 }
 0x217   :  { %v274_v63 = vperm.slane %v268_v57, %v2187_v17  ;;  %v293_v0 = vrot.slane %v278_v52, 4  ;;  %v295_v1 = vrot.slane %v286_v53, 4  ;;  %v298_v4 = vsel %vm187_vm8, 0.0, %v297_v54  ;;  %1883 = vrot.lane.b32.xlu2 %v1882_v20, %s2073_s5  ;;  %413 = vrot.lane.b32.xlu1 %v2168_v62, %s2067_s2 }
 0x218   :  { %v364_v5 = vsel %vm187_vm8, %v297_v54, %v286_v53  ;;  %v212_v6 = vsel %vm187_vm8, %v211_v55, %v194_v47  ;;  %v214_v7 = vsel %vm187_vm8, %v206_v45, %v213_v58  ;;  %417 = vrot.lane.b32.xlu0 %v2175_v3, %s2067_s2  ;;  %v369_v9 = vrot.slane %v298_v4, 4 }
 0x219   :  { %v218_v10 = vperm.slane %v212_v6, %v2187_v17  ;;  %v222_v11 = vperm.slane %v214_v7, %v2187_v17  ;;  %v230_v13 = vperm.slane %v224_v59, %v2187_v17  ;;  %v296_v14 = vsel %vm187_vm8, 0.0, %v295_v1 }
 0x21a   :  { %v234_v15 = vperm.slane %v226_v61, %v2187_v17  ;;  %v291_v16 = vrot.slane %v274_v63, 4  ;;  %v294_v20 = vsel %vm187_vm8, 0.0, %v293_v0  ;;  %v353_v30 = vsel %vm187_vm8, %v293_v0, %v274_v63 }
 0x21b   :  { %v239_v21 = vrot.slane %v230_v13, 4  ;;  %v235_v22 = vrot.slane %v218_v10, 4  ;;  %v237_v29 = vrot.slane %v222_v11, 4  ;;  %v357_v34 = vperm.slane %v353_v30, %v2173_v2 }
 0x21c   :  { %v241_v32 = vrot.slane %v234_v15, 4  ;;  %v292_v33 = vsel %vm187_vm8, 0.0, %v291_v16  ;;  %v358_v35 = vrot.slane %v294_v20, 4  ;;  %v368_v47 = vperm.slane %v364_v5, %v2173_v2 }
 0x21d   :  { %v240_v36 = vsel %vm187_vm8, 0.0, %v239_v21  ;;  %v236_v37 = vsel %vm187_vm8, 0.0, %v235_v22  ;;  %v238_v38 = vsel %vm187_vm8, 0.0, %v237_v29  ;;  %v299_v39 = vsel %vm187_vm8, %v237_v29, %v218_v10 }
 0x21e   :  { %v242_v40 = vsel %vm187_vm8, 0.0, %v241_v32  ;;  %v303_v41 = vperm.slane %v299_v39, %v2173_v2  ;;  %v304_v42 = vrot.slane %v238_v38, 4  ;;  %v310_v43 = vsel %vm187_vm8, %v241_v32, %v230_v13 }
 0x21f   :  { %v315_v44 = vrot.slane %v242_v40, 4  ;;  %v314_v45 = vperm.slane %v310_v43, %v2173_v2  ;;  %v359_v46 = vsel %vm187_vm8, %v358_v35, %v292_v33  ;;  %v370_v51 = vsel %vm187_vm8, %v369_v9, %v296_v14 }
 0x220   :  { %v305_v48 = vsel %vm187_vm8, %v304_v42, %v236_v37  ;;  %v323_v49 = vrot.slane %v303_v41, 4  ;;  %v363_v50 = vperm.slane %v359_v46, %v2173_v2  ;;  %v374_v55 = vperm.slane %v370_v51, %v2173_v2 }
 0x221   :  { %v309_v52 = vperm.slane %v305_v48, %v2173_v2  ;;  %v316_v53 = vsel %vm187_vm8, %v315_v44, %v240_v36  ;;  %v335_v54 = vrot.slane %v314_v45, 4  ;;  %v377_v58 = vrot.slane %v357_v34, 4 }
 0x222   :  { %v320_v57 = vperm.slane %v316_v53, %v2173_v2  ;;  %v389_v59 = vrot.slane %v368_v47, 4  ;;  %v375_v0 = vrot.slane %v363_v50, 4  ;;  %v387_v1 = vrot.slane %v374_v55, 4 }
 0x223   :  { %v324_v61 = vsel %vm187_vm8, %v309_v52, %v323_v49  ;;  %v321_v63 = vrot.slane %v309_v52, 4  ;;  %v378_v7 = vsel %vm187_vm8, %v363_v50, %v377_v58  ;;  %v408_v49 = vpop.permute.xlu0 %407 }
 0x224   :  { %v332_v4 = vperm.slane %v324_v61, %v2187_v17  ;;  %v336_v5 = vsel %vm187_vm8, %v320_v57, %v335_v54  ;;  %v333_v6 = vrot.slane %v320_v57, 4  ;;  %v386_v11 = vperm.slane %v378_v7, %v2187_v17 }
 0x225   :  { %v344_v9 = vperm.slane %v336_v5, %v2187_v17  ;;  %v322_v10 = vsel %vm187_vm8, %v321_v63, %v303_v41  ;;  %v390_v13 = vsel %vm187_vm8, %v374_v55, %v389_v59  ;;  %v376_v30 = vsel %vm187_vm8, %v375_v0, %v357_v34 }
 0x226   :  { %v328_v14 = vperm.slane %v322_v10, %v2187_v17  ;;  %v334_v15 = vsel %vm187_vm8, %v333_v6, %v314_v45  ;;  %v351_v16 = vrot.slane %v332_v4, 4  ;;  %v398_v20 = vperm.slane %v390_v13, %v2187_v17 }
 0x227   :  { %v349_v21 = vrot.slane %v344_v9, 4  ;;  %v340_v22 = vperm.slane %v334_v15, %v2187_v17  ;;  %v405_v29 = vrot.slane %v386_v11, 4  ;;  %v382_v36 = vperm.slane %v376_v30, %v2187_v17 }
 0x228   :  { %v2283_v32 = vsel %vm187_vm8, %v344_v9, %v351_v16  ;;  %v347_v33 = vrot.slane %v328_v14, 4  ;;  %v403_v35 = vrot.slane %v398_v20, 4  ;;  %v388_v39 = vsel %vm187_vm8, %v387_v1, %v368_v47 }
 0x229   :  { %v2287_v37 = vsel %vm187_vm8, %v349_v21, %v332_v4  ;;  %v345_v38 = vrot.slane %v340_v22, 4  ;;  %v2291_v40 = vsel %vm187_vm8, %v398_v20, %v405_v29  ;;  %v394_v42 = vperm.slane %v388_v39, %v2187_v17 }
 0x22a   :  { %v2294_v41 = vsel %vm187_vm8, %v340_v22, %v347_v33  ;;  %v2297_v34 = vsel %vm187_vm8, %v403_v35, %v386_v11  ;;  %v401_v43 = vrot.slane %v382_v36, 4  ;;  %v433_v51 = vrot.slane %v408_v49, 4 }
 0x22b   :  { %v2301_v44 = vsel %vm187_vm8, %v345_v38, %v328_v14  ;;  %v399_v45 = vrot.slane %v394_v42, 4 }
 0x22c   :  { %v2304_v46 = vsel %vm187_vm8, %v394_v42, %v401_v43 }
 0x22d   :  { %v2307_v47 = vsel %vm187_vm8, %v399_v45, %v382_v36 }
 0x251   :  { %v412_v48 = vpop.permute.xlu2 %411 }
 0x252   :  { %v445_v52 = vrot.slane %v412_v48, 4 }
 0x259   :  { %v410_v50 = vpop.permute.xlu2 %409 }
 0x25a   :  { %v489_v20 = vrot.slane %v410_v50, 4 }
 0x269   :  { %v422_v1 = vpop.permute.xlu2 %421 }
 0x26a   :  { %v499_v13 = vrot.slane %v422_v1, 4 }
 0x281   :  { %v416_v53 = vpop.permute.xlu1 %415 }
 0x282   :  { %v431_v54 = vrot.slane %v416_v53, 4  ;;  %v434_v55 = vsel %vm187_vm8, %v416_v53, %v433_v51  ;;  %v420_v57 = vpop.permute.xlu0 %419 }
 0x283   :  { %v442_v58 = vperm.slane %v434_v55, %v2173_v2  ;;  %v443_v59 = vrot.slane %v420_v57, 4  ;;  %v446_v61 = vsel %vm187_vm8, %v420_v57, %v445_v52 }
 0x284   :  { %v432_v63 = vsel %vm187_vm8, %v431_v54, %v408_v49  ;;  %v454_v0 = vperm.slane %v446_v61, %v2173_v2 }
 0x285   :  { %v438_v4 = vperm.slane %v432_v63, %v2173_v2  ;;  %v469_v5 = vrot.slane %v442_v58, 4  ;;  %v444_v6 = vsel %vm187_vm8, %v443_v59, %v412_v48 }
 0x286   :  { %v450_v7 = vperm.slane %v444_v6, %v2173_v2  ;;  %v467_v9 = vrot.slane %v454_v0, 4 }
 0x287   :  { %v457_v10 = vrot.slane %v438_v4, 4  ;;  %v470_v11 = vsel %vm187_vm8, %v454_v0, %v469_v5 }
 0x288   :  { %v455_v14 = vrot.slane %v450_v7, 4  ;;  %v468_v15 = vsel %vm187_vm8, %v467_v9, %v442_v58  ;;  %v478_v16 = vperm.slane %v470_v11, %v2187_v17 }
 0x289   :  { %v458_v21 = vsel %vm187_vm8, %v450_v7, %v457_v10  ;;  %v474_v22 = vperm.slane %v468_v15, %v2187_v17  ;;  %v414_v29 = vpop.permute.xlu1 %413 }
 0x28a   :  { %v456_v30 = vsel %vm187_vm8, %v455_v14, %v438_v4  ;;  %v466_v33 = vperm.slane %v458_v21, %v2187_v17  ;;  %v485_v35 = vrot.slane %v478_v16, 4  ;;  %v500_v36 = vsel %vm187_vm8, %v499_v13, %v414_v29  ;;  %v418_v38 = vpop.permute.xlu0 %417 }
 0x28b   :  { %v462_v39 = vperm.slane %v456_v30, %v2187_v17  ;;  %v483_v42 = vrot.slane %v474_v22, 4  ;;  %v501_v43 = vrot.slane %v414_v29, 4  ;;  %v506_v45 = vperm.slane %v500_v36, %v2173_v2 }
 0x28c   :  { %v481_v48 = vrot.slane %v466_v33, 4  ;;  %v486_v49 = vsel %vm187_vm8, 0.0, %v485_v35  ;;  %v554_v51 = vsel %vm187_vm8, %v485_v35, %v474_v22  ;;  %v487_v52 = vrot.slane %v418_v38, 4 }
 0x28d   :  { %v484_v53 = vsel %vm187_vm8, 0.0, %v483_v42  ;;  %v558_v54 = vperm.slane %v554_v51, %v2173_v2  ;;  %v559_v55 = vrot.slane %v486_v49, 4  ;;  %v502_v57 = vsel %vm187_vm8, %v422_v1, %v501_v43 }
 0x28e   :  { %v482_v58 = vsel %vm187_vm8, 0.0, %v481_v48  ;;  %v510_v59 = vperm.slane %v502_v57, %v2173_v2  ;;  %v511_v61 = vrot.slane %v506_v45, 4  ;;  %v488_v63 = vsel %vm187_vm8, %v487_v52, %v410_v50 }
 0x28f   :  { %v548_v0 = vrot.slane %v482_v58, 4  ;;  %v490_v4 = vsel %vm187_vm8, %v418_v38, %v489_v20  ;;  %v494_v5 = vperm.slane %v488_v63, %v2173_v2  ;;  %v479_v6 = vrot.slane %v462_v39, 4 }
 0x290   :  { %v523_v7 = vrot.slane %v510_v59, 4  ;;  %v498_v9 = vperm.slane %v490_v4, %v2173_v2  ;;  %v543_v10 = vsel %vm187_vm8, %v481_v48, %v462_v39  ;;  %v560_v1 = vsel %vm187_vm8, %v559_v55, %v484_v53 }
 0x291   :  { %v512_v11 = vsel %vm187_vm8, %v511_v61, %v494_v5  ;;  %v513_v13 = vrot.slane %v494_v5, 4  ;;  %v480_v14 = vsel %vm187_vm8, 0.0, %v479_v6  ;;  %v547_v50 = vperm.slane %v543_v10, %v2173_v2 }
 0x292   :  { %v518_v15 = vperm.slane %v512_v11, %v2187_v17  ;;  %v524_v16 = vsel %vm187_vm8, %v523_v7, %v498_v9  ;;  %v525_v20 = vrot.slane %v498_v9, 4  ;;  %v549_v21 = vsel %vm187_vm8, %v548_v0, %v480_v14 }
 0x293   :  { %v514_v22 = vsel %vm187_vm8, %v506_v45, %v513_v13  ;;  %v530_v29 = vperm.slane %v524_v16, %v2187_v17  ;;  %v553_v30 = vperm.slane %v549_v21, %v2173_v2  ;;  %v564_v33 = vperm.slane %v560_v1, %v2173_v2 }
 0x294   :  { %v522_v35 = vperm.slane %v514_v22, %v2187_v17  ;;  %v526_v36 = vsel %vm187_vm8, %v510_v59, %v525_v20  ;;  %v535_v38 = vrot.slane %v518_v15, 4  ;;  %v567_v39 = vrot.slane %v547_v50, 4 }
 0x295   :  { %v534_v42 = vperm.slane %v526_v36, %v2187_v17  ;;  %v539_v43 = vrot.slane %v530_v29, 4  ;;  %v579_v48 = vrot.slane %v558_v54, 4  ;;  %v565_v49 = vrot.slane %v553_v30, 4 }
 0x296   :  { %v537_v51 = vrot.slane %v522_v35, 4  ;;  %v568_v45 = vsel %vm187_vm8, %v553_v30, %v567_v39  ;;  %v577_v52 = vrot.slane %v564_v33, 4  ;;  %v536_v53 = vsel %vm187_vm8, 0.0, %v535_v38 }
 0x297   :  { %v540_v55 = vsel %vm187_vm8, 0.0, %v539_v43  ;;  %v541_v57 = vrot.slane %v534_v42, 4  ;;  %v576_v58 = vperm.slane %v568_v45, %v2187_v17  ;;  %v580_v59 = vsel %vm187_vm8, %v564_v33, %v579_v48 }
 0x298   :  { %v538_v61 = vsel %vm187_vm8, 0.0, %v537_v51  ;;  %v588_v63 = vperm.slane %v580_v59, %v2187_v17  ;;  %v566_v0 = vsel %vm187_vm8, %v565_v49, %v547_v50  ;;  %v578_v4 = vsel %vm187_vm8, %v577_v52, %v558_v54 }
 0x299   :  { %v542_v5 = vsel %vm187_vm8, 0.0, %v541_v57  ;;  %v608_v6 = vsel %vm187_vm8, %v541_v57, %v530_v29  ;;  %v572_v7 = vperm.slane %v566_v0, %v2187_v17  ;;  %v584_v9 = vperm.slane %v578_v4, %v2187_v17 }
 0x29a   :  { %v612_v10 = vperm.slane %v608_v6, %v2173_v2  ;;  %v613_v1 = vrot.slane %v542_v5, 4  ;;  %v593_v11 = vrot.slane %v588_v63, 4  ;;  %v595_v13 = vrot.slane %v576_v58, 4 }
 0x29b   :  { %v589_v14 = vrot.slane %v584_v9, 4  ;;  %v591_v16 = vrot.slane %v572_v7, 4  ;;  %v597_v20 = vsel %vm187_vm8, %v537_v51, %v518_v15  ;;  %v602_v50 = vrot.slane %v538_v61, 4 }
 0x29c   :  { %v614_v54 = vsel %vm187_vm8, %v613_v1, %v540_v55  ;;  %v594_v21 = vsel %vm187_vm8, %v593_v11, %v576_v58  ;;  %v596_v22 = vsel %vm187_vm8, %v588_v63, %v595_v13  ;;  %v601_v29 = vperm.slane %v597_v20, %v2173_v2 }
 0x29d   :  { %1840 = vmatpush.xpose.msk.msra.mxu3 %vm895_vm9, %v594_v21  ;;  %v590_v30 = vsel %vm187_vm8, %v589_v14, %v572_v7  ;;  %1842 = vmatpush.xpose.msk.msra.mxu1 %vm895_vm9, %v596_v22  ;;  %v592_v33 = vsel %vm187_vm8, %v584_v9, %v591_v16  ;;  %v603_v35 = vsel %vm187_vm8, %v602_v50, %v536_v53  ;;  %v633_v15 = vrot.slane %v612_v10, 4 }
 0x29e   :  { %1836 = vmatpush.xpose.msk.msra.mxu2 %vm895_vm9, %v590_v30  ;;  %v607_v36 = vperm.slane %v603_v35, %v2173_v2  ;;  %v618_v38 = vperm.slane %v614_v54, %v2173_v2  ;;  %v621_v39 = vrot.slane %v601_v29, 4  ;;  %v1112_v4 = vlaneseq }
 0x2a0   :  { %1841 = vmatmul.msk.f32.vlgmr.msra.gmra.mxu3 %vm895_vm9, %v2287_v37  ;;  %1843 = vmatmul.msk.f32.vlgmr.msra.gmra.mxu1 %vm895_vm9, %v2283_v32  ;;  %v619_v42 = vrot.slane %v607_v36, 4  ;;  %v622_v43 = vsel %vm187_vm8, %v607_v36, %v621_v39  ;;  %v631_v48 = vrot.slane %v618_v38, 4  ;;  %v634_v49 = vsel %vm187_vm8, %v618_v38, %v633_v15 }
 0x2a1   :  { %1837 = vmatmul.msk.f32.vlgmr.msra.gmra.mxu2 %vm895_vm9, %v2301_v44  ;;  %v630_v51 = vperm.slane %v622_v43, %v2187_v17  ;;  %v642_v45 = vperm.slane %v634_v49, %v2187_v17  ;;  %v1113_v5 = vshrl.u32 %v1112_v4, 7  ;;  %v1115_v6 = vand.u32 127, %v1112_v4 }
 0x2a2   :  { %1838 = vmatpush.xpose.msk.msrb.mxu2 %vm895_vm9, %v592_v33  ;;  %v620_v52 = vsel %vm187_vm8, %v619_v42, %v601_v29  ;;  %v632_v37 = vsel %vm187_vm8, %v631_v48, %v612_v10 }
 0x2a3   :  { %v647_v53 = vrot.slane %v642_v45, 4  ;;  %v626_v32 = vperm.slane %v620_v52, %v2187_v17  ;;  %v638_v55 = vperm.slane %v632_v37, %v2187_v17  ;;  %v649_v58 = vrot.slane %v630_v51, 4 }
 0x2a4   :  { %vm2413_vm10 = vcmp.ge.s32.totalorder %v1113_v5, %v1115_v6  ;;  %v1892_v37 = vpack.i.bf16 %v2168_v62, %v2157_v60 }
 0x2a5   :  { %v648_v57 = vsel %vm187_vm8, %v647_v53, %v630_v51  ;;  %v643_v59 = vrot.slane %v638_v55, 4  ;;  %v645_v61 = vrot.slane %v626_v32, 4  ;;  %v650_v0 = vsel %vm187_vm8, %v642_v45, %v649_v58 }
 0x2a6   :  { %1848 = vmatpush.xpose.msk.msrb.mxu1 %vm895_vm9, %v648_v57  ;;  %v1887_v53 = vpack.i.bf16 %v2198_v28, %v2191_v19 }
 0x2a7   :  { %v644_v44 = vsel %vm187_vm8, %v643_v59, %v626_v32  ;;  %v646_v63 = vsel %vm187_vm8, %v638_v55, %v645_v61  ;;  %v1897_v32 = vpack.i.bf16 %v2189_v18, %v2175_v3  ;;  %v2450_v55 = vpop.permute.xlu2 %1883 }
 0x2a8   :  { %1844 = vmatpush.xpose.msk.msra.mxu2 %vm895_vm9, %v644_v44  ;;  %1846 = vmatpush.xpose.msk.msrb.mxu3 %vm895_vm9, %v646_v63 }
 0x2a9   :  { %1839 = vmatmul.msk.f32.vlgmr.msrb.gmra.mxu2 %vm895_vm9, %v2294_v41  ;;  %1849 = vmatmul.msk.f32.vlgmr.msrb.gmra.mxu1 %vm895_vm9, %v2297_v34 }
 0x2ab   :  { %1847 = vmatmul.msk.f32.vlgmr.msrb.gmra.mxu3 %vm895_vm9, %v2304_v46 }
 0x2ac   :  { %1850 = vmatpush.xpose.msk.msrb.mxu2 %vm895_vm9, %v650_v0 }
 0x2b1   :  { %1845 = vmatmul.msk.f32.vlgmr.msra.gmra.mxu2 %vm895_vm9, %v2307_v47 }
 0x2b9   :  { %1851 = vmatmul.msk.f32.vlgmr.msrb.gmra.mxu2 %vm895_vm9, %v2291_v40 }
 0x31d   :  { %v997_v41 = vpop.f32.mrf.mxu1 }
 0x31e   :  { %v1107_v34 = vmul.f32 0.35355338, %v997_v41 }
 0x320   :  { %v1120_v9 = vsel %vm2413_vm10, %v1107_v34, -inf }
 0x321   :  { %v1134_v46 = vsel %vm895_vm9, %v1120_v9, -inf }
 0x322   :  { %1135 = vmax.xlane.f32.xlu0 %v1134_v46 }
 0x323   :  { %v971_v10 = vpop.f32.mrf.mxu3 }
 0x324   :  { %v1106_v47 = vmul.f32 0.35355338, %v971_v10  ;;  %v919_v1 = vpop.f32.mrf.mxu2 }
 0x325   :  { %v1104_v11 = vmul.f32 0.35355338, %v919_v1 }
 0x326   :  { %v1075_v40 = vpop.f32.mrf.mxu1  ;;  %v1119_v13 = vsel %vm2413_vm10, %v1106_v47, -inf }
 0x327   :  { %v1131_v14 = vsel %vm895_vm9, %v1119_v13, -inf  ;;  %v1117_v16 = vsel %vm2413_vm10, %v1104_v11, -inf  ;;  %v1110_v50 = vmul.f32 0.35355338, %v1075_v40 }
 0x328   :  { %1132 = vmax.xlane.f32.xlu2 %v1131_v14  ;;  %v1125_v20 = vsel %vm895_vm9, %v1117_v16, -inf }
 0x329   :  { %1126 = vmax.xlane.f32.xlu1 %v1125_v20  ;;  %v1123_v21 = vsel %vm2413_vm10, %v1110_v50, -inf }
 0x32a   :  { %v1143_v30 = vsel %vm895_vm9, %v1123_v21, -inf }
 0x32c   :  { %v945_v54 = vpop.f32.mrf.mxu2 }
 0x32d   :  { %v1105_v33 = vmul.f32 0.35355338, %v945_v54 }
 0x32e   :  { %v1049_v22 = vpop.f32.mrf.mxu3 }
 0x32f   :  { %v1109_v29 = vmul.f32 0.35355338, %v1049_v22  ;;  %v1118_v39 = vsel %vm2413_vm10, %v1105_v33, -inf }
 0x330   :  { %v1128_v43 = vsel %vm895_vm9, %v1118_v39, -inf }
 0x331   :  { %1144 = vmax.xlane.f32.xlu1 %v1143_v30  ;;  %v1122_v35 = vsel %vm2413_vm10, %v1109_v29, -inf }
 0x332   :  { %v1140_v15 = vsel %vm895_vm9, %v1122_v35, -inf }
 0x333   :  { %1141 = vmax.xlane.f32.xlu0 %v1140_v15 }
 0x334   :  { %v1023_v36 = vpop.f32.mrf.mxu2 }
 0x335   :  { %v1108_v38 = vmul.f32 0.35355338, %v1023_v36 }
 0x337   :  { %v1121_v42 = vsel %vm2413_vm10, %v1108_v38, -inf }
 0x338   :  { %v1137_v48 = vsel %vm895_vm9, %v1121_v42, -inf }
 0x339   :  { %1129 = vmax.xlane.f32.xlu1 %v1128_v43  ;;  %v1885_v43 = vunpack.i.l.bf16 %v2450_v55 }
 0x33b   :  { %1138 = vmax.xlane.f32.xlu0 %v1137_v48 }
 0x33c   :  { %v1101_v49 = vpop.f32.mrf.mxu2 }
 0x33d   :  { %v1111_v51 = vmul.f32 0.35355338, %v1101_v49 }
 0x33f   :  { %v1124_v45 = vsel %vm2413_vm10, %v1111_v51, -inf }
 0x340   :  { %v1146_v52 = vsel %vm895_vm9, %v1124_v45, -inf }
 0x341   :  { %1147 = vmax.xlane.f32.xlu2 %v1146_v52 }
 0x34f   :  { %1893 = vrot.lane.b32.xlu0 %v1892_v37, %s2073_s5 }
 0x352   :  { %1888 = vrot.lane.b32.xlu1 %v1887_v53, %s2073_s5 }
 0x359   :  { %1898 = vrot.lane.b32.xlu2 %v1897_v32, %s2073_s5 }
 0x395   :  { %v1136_v57 = vpop.xlane.xlu0 %1135 }
 0x396   :  { %v1152_v58 = vsub.f32 %v1120_v9, %v1136_v57 }
 0x398   :  { %v1163_v59 = vmul.f32 1.442695, %v1152_v58 }
 0x39a   :  { %1918 = vpow2.f32 %v1163_v59 }
 0x39b   :  { %v1133_v61 = vpop.xlane.xlu2 %1132 }
 0x39c   :  { %v1151_v60 = vsub.f32 %v1119_v13, %v1133_v61  ;;  %v1127_v62 = vpop.xlane.xlu1 %1126 }
 0x39d   :  { %v1149_v44 = vsub.f32 %v1117_v16, %v1127_v62 }
 0x39e   :  { %v1161_v63 = vmul.f32 1.442695, %v1151_v60 }
 0x39f   :  { %v1157_v0 = vmul.f32 1.442695, %v1149_v44 }
 0x3a0   :  { %v2452_v19 = vpop.eup %1918  ;;  %1920 = vpow2.f32 %v1161_v63  ;;  %v677_v63 = vrot.slane %v1885_v43, 4 }
 0x3a1   :  { %1922 = vpow2.f32 %v1157_v0  ;;  %v1182_v3 = vsel %vm895_vm9, %v2452_v19, 0.0 }
 0x3a2   :  { %1183 = vadd.xlane.f32.xlu1 %v1182_v3 }
 0x3a4   :  { %v1145_v18 = vpop.xlane.xlu1 %1144 }
 0x3a5   :  { %v1155_v46 = vsub.f32 %v1123_v21, %v1145_v18 }
 0x3a6   :  { %v2456_v28 = vpop.eup %1920  ;;  %v1142_v4 = vpop.xlane.xlu0 %1141 }
 0x3a7   :  { %v2458_v5 = vpop.eup %1922  ;;  %v1179_v6 = vsel %vm895_vm9, %v2456_v28, 0.0  ;;  %v1154_v1 = vsub.f32 %v1122_v35, %v1142_v4  ;;  %v1169_v40 = vmul.f32 1.442695, %v1155_v46 }
 0x3a8   :  { %1180 = vadd.xlane.f32.xlu2 %v1179_v6  ;;  %v1173_v41 = vsel %vm895_vm9, %v2458_v5, 0.0 }
 0x3a9   :  { %1174 = vadd.xlane.f32.xlu0 %v1173_v41  ;;  %v1167_v13 = vmul.f32 1.442695, %v1154_v1 }
 0x3ac   :  { %v1130_v7 = vpop.xlane.xlu1 %1129 }
 0x3ad   :  { %v1150_v34 = vsub.f32 %v1118_v39, %v1130_v7 }
 0x3ae   :  { %v1139_v9 = vpop.xlane.xlu0 %1138 }
 0x3af   :  { %v1159_v10 = vmul.f32 1.442695, %v1150_v34  ;;  %v1153_v47 = vsub.f32 %v1121_v42, %v1139_v9  ;;  %v1886_v42 = vunpack.i.h.bf16 %v2450_v55 }
 0x3b1   :  { %1924 = vpow2.f32 %v1159_v10  ;;  %v1165_v11 = vmul.f32 1.442695, %v1153_v47  ;;  %v689_v44 = vrot.slane %v1886_v42, 4 }
 0x3b3   :  { %1926 = vpow2.f32 %v1165_v11 }
 0x3b4   :  { %v1148_v14 = vpop.xlane.xlu2 %1147  ;;  %1928 = vpow2.f32 %v1169_v40 }
 0x3b5   :  { %v1156_v16 = vsub.f32 %v1124_v45, %v1148_v14  ;;  %1930 = vpow2.f32 %v1167_v13 }
 0x3b7   :  { %v2464_v20 = vpop.eup %1924  ;;  %v1171_v50 = vmul.f32 1.442695, %v1156_v16 }
 0x3b8   :  { %v1176_v54 = vsel %vm895_vm9, %v2464_v20, 0.0 }
 0x3b9   :  { %v2468_v22 = vpop.eup %1926  ;;  %1932 = vpow2.f32 %v1171_v50  ;;  %1177 = vadd.xlane.f32.xlu0 %v1176_v54 }
 0x3ba   :  { %v1185_v21 = vsel %vm895_vm9, %v2468_v22, 0.0  ;;  %v2472_v30 = vpop.eup %1928 }
 0x3bb   :  { %1186 = vadd.xlane.f32.xlu1 %v1185_v21  ;;  %v2474_v33 = vpop.eup %1930  ;;  %v1191_v38 = vsel %vm895_vm9, %v2472_v30, 0.0 }
 0x3bc   :  { %v1899_v29 = vpop.permute.xlu2 %1898  ;;  %v1188_v49 = vsel %vm895_vm9, %v2474_v33, 0.0 }
 0x3bd   :  { %v1901_v35 = vunpack.i.h.bf16 %v1899_v29  ;;  %v1900_v15 = vunpack.i.l.bf16 %v1899_v29 }
 0x3bf   :  { %v2476_v36 = vpop.eup %1932  ;;  %v743_v51 = vrot.slane %v1901_v35, 4  ;;  %v731_v45 = vrot.slane %v1900_v15, 4 }
 0x3c0   :  { %v1194_v39 = vsel %vm895_vm9, %v2476_v36, 0.0 }
 0x3c1   :  { %1192 = vadd.xlane.f32.xlu0 %v1191_v38  ;;  %1195 = vadd.xlane.f32.xlu2 %v1194_v39  ;;  %v1894_v48 = vpop.permute.xlu0 %1893 }
 0x3c2   :  { %v1896_v52 = vunpack.i.h.bf16 %v1894_v48  ;;  %v1895_v37 = vunpack.i.l.bf16 %v1894_v48 }
 0x3c3   :  { %1189 = vadd.xlane.f32.xlu1 %v1188_v49 }
 0x3c4   :  { %v744_v53 = vsel %vm187_vm8, %v743_v51, %v1896_v52  ;;  %v745_v32 = vrot.slane %v1896_v52, 4  ;;  %v732_v57 = vsel %vm187_vm8, %v731_v45, %v1895_v37  ;;  %v733_v58 = vrot.slane %v1895_v37, 4  ;;  %v1889_v59 = vpop.permute.xlu1 %1888 }
 0x3c5   :  { %v750_v55 = vperm.slane %v744_v53, %v2173_v2  ;;  %v738_v61 = vperm.slane %v732_v57, %v2173_v2  ;;  %v1891_v60 = vunpack.i.h.bf16 %v1889_v59  ;;  %v1890_v62 = vunpack.i.l.bf16 %v1889_v59 }
 0x3c6   :  { %v746_v0 = vsel %vm187_vm8, %v1901_v35, %v745_v32  ;;  %v734_v3 = vsel %vm187_vm8, %v1900_v15, %v733_v58 }
 0x3c7   :  { %v754_v18 = vperm.slane %v746_v0, %v2173_v2  ;;  %v755_v4 = vrot.slane %v750_v55, 4  ;;  %v742_v6 = vperm.slane %v734_v3, %v2173_v2  ;;  %v757_v41 = vrot.slane %v738_v61, 4 }
 0x3c8   :  { %v687_v7 = vrot.slane %v1891_v60, 4  ;;  %v690_v34 = vsel %vm187_vm8, %v1891_v60, %v689_v44  ;;  %v675_v9 = vrot.slane %v1890_v62, 4  ;;  %v678_v46 = vsel %vm187_vm8, %v1890_v62, %v677_v63 }
 0x3c9   :  { %v767_v10 = vrot.slane %v754_v18, 4  ;;  %v756_v47 = vsel %vm187_vm8, %v755_v4, %v738_v61  ;;  %v758_v1 = vsel %vm187_vm8, %v750_v55, %v757_v41  ;;  %v769_v11 = vrot.slane %v742_v6, 4 }
 0x3ca   :  { %v762_v40 = vperm.slane %v756_v47, %v2187_v17  ;;  %v766_v13 = vperm.slane %v758_v1, %v2187_v17  ;;  %v688_v14 = vsel %vm187_vm8, %v687_v7, %v1886_v42  ;;  %v698_v16 = vperm.slane %v690_v34, %v2173_v2 }
 0x3cb   :  { %v768_v50 = vsel %vm187_vm8, %v767_v10, %v742_v6  ;;  %v770_v54 = vsel %vm187_vm8, %v754_v18, %v769_v11  ;;  %v694_v21 = vperm.slane %v688_v14, %v2173_v2  ;;  %v676_v29 = vsel %vm187_vm8, %v675_v9, %v1885_v43 }
 0x3cc   :  { %v774_v35 = vperm.slane %v768_v50, %v2187_v17  ;;  %v778_v15 = vperm.slane %v770_v54, %v2187_v17  ;;  %v779_v38 = vrot.slane %v762_v40, 4  ;;  %v781_v39 = vrot.slane %v766_v13, 4 }
 0x3cd   :  { %v699_v48 = vrot.slane %v694_v21, 4  ;;  %v711_v49 = vrot.slane %v698_v16, 4  ;;  %v682_v42 = vperm.slane %v676_v29, %v2173_v2  ;;  %v686_v51 = vperm.slane %v678_v46, %v2173_v2 }
 0x3ce   :  { %v782_v45 = vsel %vm187_vm8, 0.0, %v781_v39  ;;  %v783_v52 = vrot.slane %v774_v35, 4  ;;  %v785_v37 = vrot.slane %v778_v15, 4  ;;  %v780_v53 = vsel %vm187_vm8, 0.0, %v779_v38 }
 0x3cf   :  { %v846_v32 = vrot.slane %v782_v45, 4  ;;  %v700_v43 = vsel %vm187_vm8, %v699_v48, %v682_v42  ;;  %v701_v57 = vrot.slane %v682_v42, 4  ;;  %v712_v58 = vsel %vm187_vm8, %v711_v49, %v686_v51 }
 0x3d0   :  { %v786_v59 = vsel %vm187_vm8, 0.0, %v785_v37  ;;  %v706_v55 = vperm.slane %v700_v43, %v2187_v17  ;;  %v713_v61 = vrot.slane %v686_v51, 4  ;;  %v718_v60 = vperm.slane %v712_v58, %v2187_v17 }
 0x3d1   :  { %v857_v62 = vrot.slane %v786_v59, 4  ;;  %v702_v44 = vsel %vm187_vm8, %v694_v21, %v701_v57  ;;  %v784_v63 = vsel %vm187_vm8, 0.0, %v783_v52  ;;  %v841_v0 = vsel %vm187_vm8, %v781_v39, %v762_v40 }
 0x3d2   :  { %v710_v3 = vperm.slane %v702_v44, %v2187_v17  ;;  %v714_v18 = vsel %vm187_vm8, %v698_v16, %v713_v61  ;;  %v723_v4 = vrot.slane %v706_v55, 4  ;;  %v727_v6 = vrot.slane %v718_v60, 4 }
 0x3d3   :  { %v722_v41 = vperm.slane %v714_v18, %v2187_v17  ;;  %v845_v7 = vperm.slane %v841_v0, %v2173_v2  ;;  %v847_v34 = vsel %vm187_vm8, %v846_v32, %v780_v53  ;;  %v852_v9 = vsel %vm187_vm8, %v785_v37, %v774_v35 }
 0x3d4   :  { %v725_v46 = vrot.slane %v710_v3, 4  ;;  %v728_v10 = vsel %vm187_vm8, 0.0, %v727_v6  ;;  %v724_v47 = vsel %vm187_vm8, 0.0, %v723_v4  ;;  %v851_v1 = vperm.slane %v847_v34, %v2173_v2 }
 0x3d5   :  { %v729_v11 = vrot.slane %v722_v41, 4  ;;  %v856_v40 = vperm.slane %v852_v9, %v2173_v2  ;;  %v858_v13 = vsel %vm187_vm8, %v857_v62, %v784_v63  ;;  %v865_v14 = vrot.slane %v845_v7, 4 }
 0x3d6   :  { %v726_v16 = vsel %vm187_vm8, 0.0, %v725_v46  ;;  %v787_v50 = vsel %vm187_vm8, %v725_v46, %v706_v55  ;;  %v862_v54 = vperm.slane %v858_v13, %v2173_v2  ;;  %v863_v21 = vrot.slane %v851_v1, 4 }
 0x3d7   :  { %v730_v29 = vsel %vm187_vm8, 0.0, %v729_v11  ;;  %v792_v35 = vrot.slane %v726_v16, 4  ;;  %v798_v15 = vsel %vm187_vm8, %v729_v11, %v718_v60  ;;  %v791_v38 = vperm.slane %v787_v50, %v2173_v2 }
 0x3d8   :  { %v803_v39 = vrot.slane %v730_v29, 4  ;;  %v802_v48 = vperm.slane %v798_v15, %v2173_v2  ;;  %v866_v49 = vsel %vm187_vm8, %v851_v1, %v865_v14  ;;  %v877_v42 = vrot.slane %v856_v40, 4 }
 0x3d9   :  { %v793_v51 = vsel %vm187_vm8, %v792_v35, %v724_v47  ;;  %v811_v45 = vrot.slane %v791_v38, 4  ;;  %v874_v52 = vperm.slane %v866_v49, %v2187_v17  ;;  %v864_v37 = vsel %vm187_vm8, %v863_v21, %v845_v7  ;;  %1903 = vrot.lane.b32.xlu2 %v1902_v27, %s2074_s6 }
 0x3da   :  { %v797_v53 = vperm.slane %v793_v51, %v2173_v2  ;;  %v804_v32 = vsel %vm187_vm8, %v803_v39, %v728_v10  ;;  %v823_v43 = vrot.slane %v802_v48, 4  ;;  %v878_v57 = vsel %vm187_vm8, %v862_v54, %v877_v42 }
 0x3db   :  { %v808_v58 = vperm.slane %v804_v32, %v2173_v2  ;;  %v886_v59 = vperm.slane %v878_v57, %v2187_v17  ;;  %v875_v55 = vrot.slane %v862_v54, 4  ;;  %v870_v62 = vperm.slane %v864_v37, %v2187_v17 }
 0x3dc   :  { %v812_v61 = vsel %vm187_vm8, %v797_v53, %v811_v45  ;;  %v809_v60 = vrot.slane %v797_v53, 4  ;;  %v893_v6 = vrot.slane %v874_v52, 4  ;;  %1908 = vrot.lane.b32.xlu1 %v1907_v31, %s2074_s6 }
 0x3dd   :  { %v820_v44 = vperm.slane %v812_v61, %v2187_v17  ;;  %v824_v63 = vsel %vm187_vm8, %v808_v58, %v823_v43  ;;  %v821_v0 = vrot.slane %v808_v58, 4  ;;  %v876_v4 = vsel %vm187_vm8, %v875_v55, %v856_v40 }
 0x3de   :  { %v832_v3 = vperm.slane %v824_v63, %v2187_v17  ;;  %v810_v18 = vsel %vm187_vm8, %v809_v60, %v791_v38  ;;  %v891_v41 = vrot.slane %v886_v59, 4  ;;  %v882_v47 = vperm.slane %v876_v4, %v2187_v17 }
 0x3df   :  { %v816_v7 = vperm.slane %v810_v18, %v2187_v17  ;;  %v822_v34 = vsel %vm187_vm8, %v821_v0, %v802_v48  ;;  %v839_v9 = vrot.slane %v820_v44, 4  ;;  %v889_v1 = vrot.slane %v870_v62, 4 }
 0x3e0   :  { %v837_v46 = vrot.slane %v832_v3, 4  ;;  %v828_v10 = vperm.slane %v822_v34, %v2187_v17  ;;  %v887_v40 = vrot.slane %v882_v47, 4  ;;  %v894_v50 = vsel %vm187_vm8, %v886_v59, %v893_v6 }
 0x3e1   :  { %v840_v11 = vsel %vm187_vm8, %v832_v3, %v839_v9  ;;  %v835_v13 = vrot.slane %v816_v7, 4  ;;  %v892_v54 = vsel %vm187_vm8, %v891_v41, %v874_v52  ;;  %v890_v35 = vsel %vm187_vm8, %v882_v47, %v889_v1 }
 0x3e2   :  { %v838_v14 = vsel %vm187_vm8, %v837_v46, %v820_v44  ;;  %v833_v16 = vrot.slane %v828_v10, 4  ;;  %1300 = vmatpush.msra.mxu2 %v840_v11  ;;  %v888_v15 = vsel %vm187_vm8, %v887_v40, %v870_v62 }
 0x3e3   :  { %1277 = vmatpush.msra.mxu1 %v838_v14  ;;  %v836_v21 = vsel %vm187_vm8, %v828_v10, %v835_v13 }
 0x3e4   :  { %1392 = vmatpush.msrb.mxu2 %v894_v50  ;;  %v834_v29 = vsel %vm187_vm8, %v833_v16, %v816_v7  ;;  %1254 = vmatpush.msrb.mxu0 %v836_v21 }
 0x3e5   :  { %1369 = vmatpush.msrb.mxu1 %v892_v54  ;;  %1231 = vmatpush.msra.mxu3 %v834_v29 }
 0x3e6   :  { %1346 = vmatpush.msra.mxu0 %v890_v35 }
 0x3e7   :  { %1323 = vmatpush.msrb.mxu3 %v888_v15 }
 0x415   :  { %v1184_v38 = vpop.xlane.xlu1 %1183 }
 0x416   :  { %1934 = vrcp.f32 %v1184_v38 }
 0x41b   :  { %v1181_v39 = vpop.xlane.xlu2 %1180 }
 0x41c   :  { %v1935_v48 = vpop.eup %1934  ;;  %1936 = vrcp.f32 %v1181_v39  ;;  %v1175_v49 = vpop.xlane.xlu0 %1174 }
 0x41d   :  { %v1208_v42 = vmul.f32 %v1935_v48, %v2452_v19  ;;  %1938 = vrcp.f32 %v1175_v49 }
 0x41f   :  { %1855 = vmatmul.msk.f32.vlgmr.msra.gmra.mxu2 %vm895_vm9, %v1208_v42 }
 0x422   :  { %v1937_v51 = vpop.eup %1936 }
 0x423   :  { %v1939_v45 = vpop.eup %1938  ;;  %v1207_v52 = vmul.f32 %v1937_v51, %v2456_v28 }
 0x424   :  { %v1205_v37 = vmul.f32 %v1939_v45, %v2458_v5 }
 0x425   :  { %1854 = vmatmul.msk.f32.vlgmr.msra.gmra.mxu1 %vm895_vm9, %v1207_v52 }
 0x426   :  { %1852 = vmatmul.msk.f32.vlgmr.msra.gmra.mxu3 %vm895_vm9, %v1205_v37 }
 0x42c   :  { %v1178_v53 = vpop.xlane.xlu0 %1177 }
 0x42d   :  { %1940 = vrcp.f32 %v1178_v53 }
 0x42e   :  { %v1187_v32 = vpop.xlane.xlu1 %1186 }
 0x42f   :  { %1942 = vrcp.f32 %v1187_v32 }
 0x433   :  { %v1941_v43 = vpop.eup %1940 }
 0x434   :  { %v1196_v57 = vpop.xlane.xlu2 %1195  ;;  %v1193_v19 = vpop.xlane.xlu0 %1192  ;;  %v1206_v58 = vmul.f32 %v1941_v43, %v2464_v20 }
 0x435   :  { %v1943_v59 = vpop.eup %1942  ;;  %1944 = vrcp.f32 %v1196_v57 }
 0x436   :  { %v1209_v55 = vmul.f32 %v1943_v59, %v2468_v22  ;;  %1946 = vrcp.f32 %v1193_v19  ;;  %v1190_v28 = vpop.xlane.xlu1 %1189  ;;  %1853 = vmatmul.msk.f32.vlgmr.msrb.gmra.mxu0 %vm895_vm9, %v1206_v58 }
 0x437   :  { %1948 = vrcp.f32 %v1190_v28 }
 0x438   :  { %1856 = vmatmul.msk.f32.vlgmr.msrb.gmra.mxu3 %vm895_vm9, %v1209_v55 }
 0x43b   :  { %v1945_v5 = vpop.eup %1944 }
 0x43c   :  { %v1947_v61 = vpop.eup %1946  ;;  %v1212_v60 = vmul.f32 %v1945_v5, %v2476_v36 }
 0x43d   :  { %v1949_v62 = vpop.eup %1948  ;;  %v1211_v44 = vmul.f32 %v1947_v61, %v2472_v30 }
 0x43e   :  { %v1210_v20 = vmul.f32 %v1949_v62, %v2474_v33  ;;  %1859 = vmatmul.msk.f32.vlgmr.msrb.gmra.mxu2 %vm895_vm9, %v1212_v60 }
 0x43f   :  { %1858 = vmatmul.msk.f32.vlgmr.msrb.gmra.mxu1 %vm895_vm9, %v1211_v44 }
 0x440   :  { %1857 = vmatmul.msk.f32.vlgmr.msra.gmra.mxu0 %vm895_vm9, %v1210_v20 }
 0x4a2   :  { %v1279_v22 = vpop.f32.mrf.mxu1  ;;  %v1302_v0 = vpop.f32.mrf.mxu2 }
 0x4a3   :  { %v1397_v33 = vrot.slane %v1279_v22, 4  ;;  %v1409_v4 = vrot.slane %v1302_v0, 4 }
 0x4a9   :  { %v1233_v30 = vpop.f32.mrf.mxu3 }
 0x4aa   :  { %v1399_v36 = vrot.slane %v1233_v30, 4  ;;  %v1398_v63 = vsel %vm187_vm8, %v1397_v33, %v1233_v30 }
 0x4ab   :  { %v1404_v18 = vperm.slane %v1398_v63, %v2173_v2 }
 0x4ac   :  { %v1400_v3 = vsel %vm187_vm8, %v1279_v22, %v1399_v36 }
 0x4ad   :  { %v1408_v23 = vperm.slane %v1400_v3, %v2173_v2  ;;  %v1423_v25 = vrot.slane %v1404_v18, 4 }
 0x4af   :  { %v1435_v41 = vrot.slane %v1408_v23, 4 }
 0x4b3   :  { %v1256_v24 = vpop.f32.mrf.mxu0 }
 0x4b4   :  { %v1410_v27 = vsel %vm187_vm8, %v1409_v4, %v1256_v24  ;;  %v1411_v6 = vrot.slane %v1256_v24, 4 }
 0x4b5   :  { %v1416_v26 = vperm.slane %v1410_v27, %v2173_v2 }
 0x4b6   :  { %v1412_v31 = vsel %vm187_vm8, %v1302_v0, %v1411_v6 }
 0x4b7   :  { %v1420_v7 = vperm.slane %v1412_v31, %v2173_v2  ;;  %v1421_v34 = vrot.slane %v1416_v26, 4  ;;  %v1424_v9 = vsel %vm187_vm8, %v1416_v26, %v1423_v25 }
 0x4b8   :  { %v1432_v46 = vperm.slane %v1424_v9, %v2187_v17 }
 0x4b9   :  { %v1422_v10 = vsel %vm187_vm8, %v1421_v34, %v1404_v18  ;;  %v1433_v47 = vrot.slane %v1420_v7, 4  ;;  %v1436_v1 = vsel %vm187_vm8, %v1420_v7, %v1435_v41 }
 0x4ba   :  { %v1428_v11 = vperm.slane %v1422_v10, %v2187_v17  ;;  %v1444_v13 = vperm.slane %v1436_v1, %v2187_v17  ;;  %v1447_v14 = vrot.slane %v1432_v46, 4 }
 0x4bb   :  { %v1434_v16 = vsel %vm187_vm8, %v1433_v47, %v1408_v23  ;;  %v1325_v40 = vpop.f32.mrf.mxu3 }
 0x4bc   :  { %v1440_v50 = vperm.slane %v1434_v16, %v2187_v17  ;;  %v1445_v54 = vrot.slane %v1428_v11, 4  ;;  %v1448_v21 = vsel %vm187_vm8, 0.0, %v1447_v14  ;;  %v1451_v29 = vrot.slane %v1444_v13, 4  ;;  %v1371_v35 = vpop.f32.mrf.mxu1 }
 0x4bd   :  { %v1509_v15 = vsel %vm187_vm8, %v1447_v14, %v1428_v11  ;;  %v1514_v38 = vrot.slane %v1448_v21, 4  ;;  %v1455_v39 = vrot.slane %v1325_v40, 4  ;;  %v1453_v48 = vrot.slane %v1371_v35, 4  ;;  %v1348_v49 = vpop.f32.mrf.mxu0 }
 0x4be   :  { %v1446_v42 = vsel %vm187_vm8, 0.0, %v1445_v54  ;;  %v1452_v51 = vsel %vm187_vm8, 0.0, %v1451_v29  ;;  %v1513_v45 = vperm.slane %v1509_v15, %v2173_v2  ;;  %v1467_v52 = vrot.slane %v1348_v49, 4 }
 0x4bf   :  { %v1525_v37 = vrot.slane %v1452_v51, 4  ;;  %v1454_v53 = vsel %vm187_vm8, %v1453_v48, %v1325_v40  ;;  %v1456_v32 = vsel %vm187_vm8, %v1371_v35, %v1455_v39  ;;  %v1449_v43 = vrot.slane %v1440_v50, 4 }
 0x4c0   :  { %v1460_v57 = vperm.slane %v1454_v53, %v2173_v2  ;;  %v1464_v19 = vperm.slane %v1456_v32, %v2173_v2  ;;  %v1515_v58 = vsel %vm187_vm8, %v1514_v38, %v1446_v42  ;;  %v1520_v59 = vsel %vm187_vm8, %v1451_v29, %v1440_v50  ;;  %v1904_v38 = vpop.permute.xlu2 %1903 }
 0x4c1   :  { %v1394_v55 = vpop.f32.mrf.mxu2  ;;  %v1450_v28 = vsel %vm187_vm8, 0.0, %v1449_v43  ;;  %v1519_v5 = vperm.slane %v1515_v58, %v2173_v2  ;;  %v1524_v61 = vperm.slane %v1520_v59, %v2173_v2  ;;  %v1533_v60 = vrot.slane %v1513_v45, 4 }
 0x4c2   :  { %v1491_v62 = vrot.slane %v1464_v19, 4  ;;  %v1465_v44 = vrot.slane %v1394_v55, 4  ;;  %v1468_v20 = vsel %vm187_vm8, %v1394_v55, %v1467_v52  ;;  %v1526_v30 = vsel %vm187_vm8, %v1525_v37, %v1450_v28 }
 0x4c3   :  { %v1476_v22 = vperm.slane %v1468_v20, %v2173_v2  ;;  %v1534_v33 = vsel %vm187_vm8, %v1519_v5, %v1533_v60  ;;  %v1545_v36 = vrot.slane %v1524_v61, 4  ;;  %v1530_v0 = vperm.slane %v1526_v30, %v2173_v2 }
 0x4c4   :  { %v1466_v63 = vsel %vm187_vm8, %v1465_v44, %v1348_v49  ;;  %v2627_v3 = vperm.slane %v1534_v33, %v2187_v17  ;;  %v1531_v18 = vrot.slane %v1519_v5, 4  ;;  %v1479_v4 = vrot.slane %v1460_v57, 4 }
 0x4c5   :  { %v1472_v23 = vperm.slane %v1466_v63, %v2173_v2  ;;  %v1489_v24 = vrot.slane %v1476_v22, 4  ;;  %v1492_v27 = vsel %vm187_vm8, %v1476_v22, %v1491_v62  ;;  %v1546_v25 = vsel %vm187_vm8, %v1530_v0, %v1545_v36 }
 0x4c6   :  { %v1500_v6 = vperm.slane %v1492_v27, %v2187_v17  ;;  %v1561_v26 = vrot.slane %v2627_v3, 4  ;;  %v1532_v31 = vsel %vm187_vm8, %v1531_v18, %v1513_v45  ;;  %v1554_v9 = vperm.slane %v1546_v25, %v2187_v17 }
 0x4c7   :  { %v1477_v41 = vrot.slane %v1472_v23, 4  ;;  %v1480_v7 = vsel %vm187_vm8, %v1472_v23, %v1479_v4  ;;  %v1490_v34 = vsel %vm187_vm8, %v1489_v24, %v1464_v19  ;;  %v1538_v1 = vperm.slane %v1532_v31, %v2187_v17 }
 0x4c8   :  { %v1488_v46 = vperm.slane %v1480_v7, %v2187_v17  ;;  %v1496_v10 = vperm.slane %v1490_v34, %v2187_v17  ;;  %v1507_v47 = vrot.slane %v1500_v6, 4  ;;  %v1562_v13 = vsel %vm187_vm8, %v1554_v9, %v1561_v26 }
 0x4c9   :  { %v1478_v11 = vsel %vm187_vm8, %v1477_v41, %v1460_v57  ;;  %v1543_v14 = vrot.slane %v1530_v0, 4  ;;  %1635 = vrot.lane.b32.xlu2 %v1562_v13, %s2061_s21  ;;  %v1557_v15 = vrot.slane %v1538_v1, 4  ;;  %v1906_v42 = vunpack.i.h.bf16 %v1904_v38 }
 0x4ca   :  { %v1484_v16 = vperm.slane %v1478_v11, %v2187_v17  ;;  %v1503_v40 = vrot.slane %v1488_v46, 4  ;;  %v1505_v50 = vrot.slane %v1496_v10, 4  ;;  %v1508_v54 = vsel %vm187_vm8, 0.0, %v1507_v47 }
 0x4cb   :  { %v1574_v21 = vsel %vm187_vm8, %v1507_v47, %v1496_v10  ;;  %v1579_v29 = vrot.slane %v1508_v54, 4  ;;  %v1544_v35 = vsel %vm187_vm8, %v1543_v14, %v1524_v61  ;;  %v1905_v55 = vunpack.i.l.bf16 %v1904_v38 }
 0x4cc   :  { %v1501_v39 = vrot.slane %v1484_v16, 4  ;;  %v1504_v48 = vsel %vm187_vm8, 0.0, %v1503_v40  ;;  %v1550_v49 = vperm.slane %v1544_v35, %v2187_v17  ;;  %v1506_v45 = vsel %vm187_vm8, 0.0, %v1505_v50 }
 0x4cd   :  { %v1568_v51 = vrot.slane %v1504_v48, 4  ;;  %v1563_v52 = vsel %vm187_vm8, %v1503_v40, %v1484_v16  ;;  %v1578_v37 = vperm.slane %v1574_v21, %v2173_v2  ;;  %v1580_v58 = vsel %vm187_vm8, %v1579_v29, %v1506_v45  ;;  %1687 = vmatpush.msra.mxu3 %v1905_v55  ;;  %v1954_v29 = vld [vmem:[#allocation2] sm:$0xff]  ;;  %v1955_v48 = vld [vmem:[#allocation2 + $0x8] sm:$0xff] }
 0x4ce   :  { %v1555_v53 = vrot.slane %v1550_v49, 4  ;;  %v1558_v32 = vsel %vm187_vm8, %v1550_v49, %v1557_v15  ;;  %v1502_v43 = vsel %vm187_vm8, 0.0, %v1501_v39  ;;  %v1567_v57 = vperm.slane %v1563_v52, %v2173_v2  ;;  %v69_v55 = vld [vmem:[#allocation5 + $0x38] sm:$0xff] }
 0x4cf   :  { %1619 = vrot.lane.b32.xlu0 %v1558_v32, %s2064_s25  ;;  %v1569_v19 = vsel %vm187_vm8, %v1568_v51, %v1502_v43  ;;  %v1599_v59 = vrot.slane %v1578_v37, 4  ;;  %v1584_v5 = vperm.slane %v1580_v58, %v2173_v2  ;;  %v1559_v62 = vrot.slane %v1554_v9, 4  ;;  %1688 = vmatpush.msra.mxu3 %v1906_v42 }
 0x4d0   :  { %v1573_v28 = vperm.slane %v1569_v19, %v2173_v2  ;;  %v1587_v61 = vrot.slane %v1567_v57, 4  ;;  %v1556_v60 = vsel %vm187_vm8, %v1555_v53, %v1538_v1 }
 0x4d1   :  { %v1600_v20 = vsel %vm187_vm8, %v1584_v5, %v1599_v59  ;;  %v1597_v30 = vrot.slane %v1584_v5, 4  ;;  %v1560_v23 = vsel %vm187_vm8, %v1559_v62, %v2627_v3  ;;  %v1909_v3 = vpop.permute.xlu1 %1908  ;;  %v72_v59 = vld [vmem:[#allocation5 + $0x50] sm:$0xff]  ;;  %v63_v62 = vld [vmem:[#allocation5 + $0x8] sm:$0xff] }
 0x4d2   :  { %v1588_v44 = vsel %vm187_vm8, %v1573_v28, %v1587_v61  ;;  %v1585_v22 = vrot.slane %v1573_v28, 4  ;;  %v1608_v2 = vperm.slane %v1600_v20, %v2187_v17  ;;  %v1911_v41 = vunpack.i.h.bf16 %v1909_v3  ;;  %1773 = vmatpush.msrb.mxu0 %v72_v59  ;;  %v66_v61 = vld [vmem:[#allocation5 + $0x20] sm:$0xff] }
 0x4d3   :  { %v1596_v33 = vperm.slane %v1588_v44, %v2187_v17  ;;  %v1598_v63 = vsel %vm187_vm8, %v1597_v30, %v1578_v37  ;;  %v1910_v7 = vunpack.i.l.bf16 %v1909_v3  ;;  %v73_v44 = vld [vmem:[#allocation5 + $0x58] sm:$0xff]  ;;  %v70_v20 = vld [vmem:[#allocation5 + $0x40] sm:$0xff] }
 0x4d4   :  { %v1586_v36 = vsel %vm187_vm8, %v1585_v22, %v1567_v57  ;;  %v1604_v4 = vperm.slane %v1598_v63, %v2187_v17  ;;  %v1613_v31 = vrot.slane %v1608_v2, 4  ;;  %1774 = vmatpush.msrb.mxu0 %v69_v55  ;;  %1799 = vmatpush.xpose.msra.mxu1 %v73_v44 }
 0x4d5   :  { %v1615_v0 = vrot.slane %v1596_v33, 4  ;;  %v1592_v18 = vperm.slane %v1586_v36, %v2187_v17  ;;  %1689 = vmatpush.msra.mxu3 %v1910_v7  ;;  %v67_v36 = vld [vmem:[#allocation5 + $0x28] sm:$0xff] }
 0x4d6   :  { %v1609_v27 = vrot.slane %v1604_v4, 4  ;;  %v1614_v17 = vsel %vm187_vm8, %v1613_v31, %v1596_v33  ;;  %1775 = vmatpush.msrb.mxu0 %v66_v61 }
 0x4d7   :  { %1627 = vrot.lane.b32.xlu0 %v1560_v23, %s2075_s7  ;;  %v1616_v24 = vsel %vm187_vm8, %v1608_v2, %v1615_v0  ;;  %v1611_v6 = vrot.slane %v1592_v18, 4  ;;  %1690 = vmatpush.msra.mxu3 %v1911_v41 }
 0x4d8   :  { %1637 = vrot.lane.b32.xlu2 %v1616_v24, %s2061_s21  ;;  %v1610_v26 = vsel %vm187_vm8, %v1609_v27, %v1592_v18  ;;  %1776 = vmatpush.msrb.mxu0 %v63_v62 }
 0x4d9   :  { %v1612_v25 = vsel %vm187_vm8, %v1604_v4, %v1611_v6  ;;  %1800 = vmatpush.xpose.msra.mxu1 %v70_v20 }
 0x4da   :  { %1621 = vrot.lane.b32.xlu1 %v1612_v25, %s2064_s25 }
 0x4dd   :  { %1801 = vmatpush.xpose.msra.mxu1 %v67_v36 }
 0x4df   :  { %1629 = vrot.lane.b32.xlu0 %v1614_v17, %s2075_s7 }
 0x4e2   :  { %1666 = vrot.lane.b32.xlu1 %v2148_v56, %s2074_s6 }
 0x523   :  { %v1636_v10 = vpop.permute.xlu2 %1635 }
 0x532   :  { %v1638_v14 = vpop.permute.xlu2 %1637 }
 0x541   :  { %v1620_v34 = vpop.permute.xlu0 %1619 }
 0x542   :  { %v1641_v9 = vsel %vm895_vm9, %v1556_v60, %v1620_v34 }
 0x549   :  { %v1628_v46 = vpop.permute.xlu0 %1627 }
 0x54a   :  { %v1644_v47 = vsel %vm1643_vm11, %v1641_v9, %v1628_v46 }
 0x54b   :  { %v1647_v1 = vsel %vm1646_vm12, %v1644_v47, %v1636_v10  ;;  %v64_v47 = vld [vmem:[#allocation5 + $0x10] sm:$0xff] }
 0x54c   :  { %1860 = vmatmul.msk.f32.vlgmr.msra.gmra.mxu3 %vm75_vm0, %v1647_v1  ;;  %v1622_v11 = vpop.permute.xlu1 %1621  ;;  %1802 = vmatpush.xpose.msra.mxu1 %v64_v47  ;;  %v1956_v1 = vld [vmem:[#allocation7] sm:$0xf] }
 0x54d   :  { %v1642_v13 = vsel %vm895_vm9, %v1610_v26, %v1622_v11  ;;  %v1754_v11 = vperm.slane %v1956_v1, 2 }
 0x551   :  { %v1630_v56 = vpop.permute.xlu0 %1629 }
 0x552   :  { %v1645_v16 = vsel %vm1643_vm11, %v1642_v13, %v1630_v56 }
 0x553   :  { %v1648_v40 = vsel %vm1646_vm12, %v1645_v16, %v1638_v14 }
 0x554   :  { %1861 = vmatmul.msk.f32.gmra.mxu3 %vm75_vm0, %v1648_v40  ;;  %v1667_v50 = vpop.permute.xlu1 %1666 }
 0x5cf   :  { %v1692_v54 = vpop.f32.mrf.mxu3 }
 0x5d0   :  { %v1693_v21 = vadd.f32 %v1692_v54, %v1667_v50  ;;  %v1786_v54 = vperm.slane %v1956_v1, 3 }
 0x5d2   :  { %v2684_v35 = vadd.f32 %v1954_v29, %v1693_v21 }
 0x5d4   :  { %v1700_v15 = vsel %vm75_vm0, %v2684_v35, 0.0 }
 0x5d5   :  { %1701 = vadd.xlane.f32.xlu0 %v1700_v15 }
 0x5d7   :  { %v1695_v38 = vpop.f32.mrf.mxu3 }
 0x5d8   :  { %v1696_v39 = vadd.f32 %v1695_v38, %v1667_v50 }
 0x5da   :  { %v2688_v49 = vadd.f32 %v1955_v48, %v1696_v39 }
 0x5dc   :  { %v1703_v42 = vsel %vm75_vm0, %v2688_v49, 0.0 }
 0x5dd   :  { %1704 = vadd.xlane.f32.xlu2 %v1703_v42 }
 0x5f5   :  { %1744 = vrot.lane.b32.xlu2 %v2115_v8, %s2073_s5 }
 0x648   :  { %v1702_v51 = vpop.xlane.xlu0 %1701 }
 0x649   :  { %v1706_v45 = vmul.f32 %v1702_v51, %v2119_v12 }
 0x64b   :  { %v1708_v52 = vsub.f32 %v2684_v35, %v1706_v45 }
 0x64d   :  { %v1710_v37 = vmul.f32 %v1708_v52, %v1708_v52 }
 0x64f   :  { %v1712_v53 = vsel %vm75_vm0, %v1710_v37, 0.0 }
 0x650   :  { %1713 = vadd.xlane.f32.xlu1 %v1712_v53  ;;  %v1705_v32 = vpop.xlane.xlu2 %1704 }
 0x651   :  { %v1707_v43 = vmul.f32 %v1705_v32, %v2119_v12 }
 0x653   :  { %v1709_v57 = vsub.f32 %v2688_v49, %v1707_v43 }
 0x655   :  { %v1711_v19 = vmul.f32 %v1709_v57, %v1709_v57 }
 0x657   :  { %v1715_v58 = vsel %vm75_vm0, %v1711_v19, 0.0 }
 0x658   :  { %1716 = vadd.xlane.f32.xlu0 %v1715_v58  ;;  %v1745_v25 = vpop.permute.xlu2 %1744 }
 0x669   :  { %1749 = vrot.lane.b32.xlu1 %v2115_v8, %s2074_s6 }
 0x6c3   :  { %v1714_v28 = vpop.xlane.xlu1 %1713 }
 0x6c4   :  { %v1718_v5 = vmul.f32 %v1714_v28, %v2119_v12 }
 0x6c6   :  { %v1720_v60 = vadd.f32 1e-05, %v1718_v5 }
 0x6c8   :  { %1950 = vrsqrt.f32 %v1720_v60  ;;  %vm1728_vm14 = vweird.f32 %v1720_v60 }
 0x6cb   :  { %v1717_v22 = vpop.xlane.xlu0 %1716 }
 0x6cc   :  { %v1719_v30 = vmul.f32 %v1717_v22, %v2119_v12 }
 0x6ce   :  { %v1951_v8 = vpop.eup %1950  ;;  %v1721_v33 = vadd.f32 1e-05, %v1719_v30 }
 0x6cf   :  { %v1723_v63 = vmul.f32 %v1951_v8, %v1720_v60  ;;  %vm1729_vm13 = vweird.f32 %v1951_v8 }
 0x6d0   :  { %1952 = vrsqrt.f32 %v1721_v33  ;;  %vm1730_vm15 = vmor %vm1728_vm14, %vm1729_vm13  ;;  %vm1738_vm2 = vweird.f32 %v1721_v33 }
 0x6d1   :  { %v1724_v2 = vmul.f32 %v1951_v8, %v1723_v63 }
 0x6d3   :  { %v1725_v0 = vmul.f32 0.5, %v1724_v2 }
 0x6d5   :  { %v1726_v18 = vsub.f32 1.5, %v1725_v0 }
 0x6d6   :  { %v1953_v4 = vpop.eup %1952 }
 0x6d7   :  { %v1733_v23 = vmul.f32 %v1953_v4, %v1721_v33  ;;  %v1727_v24 = vmul.f32 %v1951_v8, %v1726_v18  ;;  %vm1739_vm1 = vweird.f32 %v1953_v4 }
 0x6d8   :  { %vm1740_vm3 = vmor %vm1738_vm2, %vm1739_vm1 }
 0x6d9   :  { %v1734_v27 = vmul.f32 %v1953_v4, %v1733_v23  ;;  %v1731_v6 = vsel %vm1730_vm15, %v1951_v8, %v1727_v24 }
 0x6da   :  { %v1742_v12 = vmul.f32 %v1731_v6, %v1708_v52 }
 0x6db   :  { %v1735_v26 = vmul.f32 0.5, %v1734_v27  ;;  %v1750_v31 = vpop.permute.xlu1 %1749 }
 0x6dc   :  { %v1747_v17 = vmul.f32 %v1745_v25, %v1742_v12 }
 0x6dd   :  { %v1736_v3 = vsub.f32 1.5, %v1735_v26 }
 0x6de   :  { %v1752_v41 = vadd.f32 %v1750_v31, %v1747_v17 }
 0x6df   :  { %v1737_v7 = vmul.f32 %v1953_v4, %v1736_v3 }
 0x6e0   :  { %1862 = vmatmul.msk.f32.vlgmr.msrb.gmra.mxu0 %vm75_vm0, %v1752_v41 }
 0x6e1   :  { %v1741_v34 = vsel %vm1740_vm3, %v1953_v4, %v1737_v7 }
 0x6e2   :  { %v1743_v9 = vmul.f32 %v1741_v34, %v1709_v57 }
 0x6e4   :  { %v1748_v46 = vmul.f32 %v1745_v25, %v1743_v9 }
 0x6e6   :  { %v1753_v10 = vadd.f32 %v1750_v31, %v1748_v46 }
 0x6e8   :  { %1863 = vmatmul.msk.f32.gmra.mxu0 %vm75_vm0, %v1753_v10 }
 0x75d   :  { %v1778_v13 = vpop.f32.mrf.mxu0 }
 0x75e   :  { %v1779_v56 = vadd.f32 %v1778_v13, %v1754_v11 }
 0x760   :  { %v1784_v14 = vmax.f32 %v1779_v56, 0.0 }
 0x762   :  { %1803 = vmatmul.f32.vlgmr.msra.gmra.mxu1 %v1784_v14 }
 0x765   :  { %v1781_v16 = vpop.f32.mrf.mxu0 }
 0x766   :  { %v1782_v40 = vadd.f32 %v1781_v16, %v1754_v11 }
 0x768   :  { %v1785_v50 = vmax.f32 %v1782_v40, 0.0 }
 0x76a   :  { %1806 = vmatmul.f32.gmra.mxu1 %v1785_v50 }
 0x7df   :  { %v1804_v21 = vpop.f32.mrf.mxu1 }
 0x7e0   :  { %v1805_v29 = vadd.f32 %v1804_v21, %v1786_v54 }
 0x7e2   :  { %v1810_v15 = vadd.f32 %v1805_v29, %v2684_v35 }
 0x7e4   :  { %1812 = vst.msk [vmem:[#allocation8] sm:$0xff] %vm75_vm0, %v1810_v15 }
 0x7e7   :  { %v1807_v38 = vpop.f32.mrf.mxu1 }
 0x7e8   :  { %v1808_v39 = vadd.f32 %v1807_v38, %v1786_v54 }
 0x7ea   :  { %v1811_v48 = vadd.f32 %v1808_v39, %v2688_v49 }
 0x7ec   :  { %1813 = vst.msk [vmem:[#allocation8 + $0x8] sm:$0xff] %vm75_vm0, %v1811_v48 }
 0x7ed   :  { %1826 = dma.vmem_to_hbm [thread:$0]  %s1819_s9, 256, %s1821_s12, [#allocation4], %s2063_s24, %s2063_s24, %s2064_s25  }
 0x7ee   :  { %2057 = dma.done.wait [#allocation4], 256  }
 0x7ef   :  { %2058 = vsyncadd [#allocation4], 4294967040 }
 0x7f0   :  { %1831 = vsyncpa [#allocation3], 1 }
 0x7f1   :  { %1832 = vsyncpa [#allocation6], 1 }
 0x7f2   :  { %1833 = vsyncpa [#allocation4], 1 }

</bundles_post_ra>
